<compile_context>
chip_gen: v6e
topology: v6e:2x2x1
jax: 0.10.0
libtpu: 0.0.40
codegen_flags: <defaults>
</compile_context>

<pallas_src>
import functools

import jax
import jax.numpy as jnp
from jax import lax
from jax.experimental import pallas as pl
from jax.experimental.pallas import tpu as pltpu


def _centernet_head_kernel(x_ref, w1_ref, b1_ref, w2_ref, b2_ref, out_ref, xp_ref,
                           *, H, W, C, CH_PAD):
    """One grid step == one image.

    x_ref  : VMEM (1, H, W, C)        unpadded NHWC input image (f32)
    w1_ref : VMEM (9, C, CH_PAD)      fused 3x3 conv weights, per-tap, all heads (bf16)
    b1_ref : VMEM (1, CH_PAD)         fused 3x3 conv biases (f32, zero-padded)
    w2_ref : VMEM (CH_PAD, OUT)       block-diagonal fused 1x1 conv weights (bf16)
    b2_ref : VMEM (1, OUT)            fused 1x1 conv biases (f32)
    out_ref: VMEM (1, H*W, OUT)       packed [heatmap | wh | offset] on the lane axis
    xp_ref : VMEM scratch (H+2, W+2, C) f32  -- in-kernel zero-padded halo slab
    """
    HW = H * W

    # Build the 1-px zero-padded image in VMEM (replaces the wrapper-side jnp.pad, which
    # cost a full extra HBM read+write pass over the activations).
    xp_ref[...] = jnp.zeros_like(xp_ref)
    xp_ref[1:H + 1, 1:W + 1, :] = x_ref[0]

    # Feed the MXU in bf16 (f32 accumulation); cast once so downstream relayouts are
    # half-width.
    xp = xp_ref[...].astype(jnp.bfloat16)                       # (H+2, W+2, C)

    # Hoist the W-axis (sublane) shifts: 3 shifted slabs instead of 9.
    # xs[dx][y*W + x, :] == xp[y, x+dx, :]; since W % 8 == 0 the reshape is a pure
    # re-labelling of sublane tiles (no data movement).
    xs = [xp[:, dx:dx + W, :].reshape((H + 2) * W, C) for dx in range(3)]

    # Fused 3x3 convs of all three heads: 9 accumulated MXU matmuls, no im2col slab.
    acc = jnp.zeros((HW, CH_PAD), jnp.float32)
    for dy in range(3):
        for dx in range(3):
            tap = xs[dx][dy * W: dy * W + HW, :]                # sublane-aligned row slice
            acc = acc + jnp.dot(tap, w1_ref[dy * 3 + dx],
                                preferred_element_type=jnp.float32)

    # bias + ReLU in f32 (hidden is a full 128-lane tile thanks to CH_PAD).
    hidden = jnp.maximum(acc + b1_ref[...], 0.0)                # (HW, CH_PAD)

    # Fused block-diagonal 1x1 convs: ONE matmul, one packed lane store.
    out = jnp.dot(hidden.astype(jnp.bfloat16), w2_ref[...],
                  preferred_element_type=jnp.float32) + b2_ref[...]
    out_ref[0] = out.astype(out_ref.dtype)


def centernet_head_forward(x_nchw, w1_list, b1_list, w2_list, b2_list):
    """CenterNetHead forward.

    x_nchw : (N, C, H, W) float32 input (PyTorch layout).
    w1_list: three (C, C, 3, 3) conv weights (torch OIHW), one per head.
    b1_list: three (C,) biases for the 3x3 convs (use_bn=False => conv has bias, no BN).
    w2_list: three (out_h, C, 1, 1) 1x1 conv weights (out_h = num_classes, 2, 2).
    b2_list: three (out_h,) biases.
    Returns (heatmap, wh, offset) in NCHW, matching the PyTorch module.
    """
    N, C, H, W = x_nchw.shape
    assert W % 8 == 0, "W must be a multiple of 8 for the sublane-aligned tap slices"
    out_dims = [w.shape[0] for w in w2_list]
    OUT = sum(out_dims)
    CH = 3 * C
    CH_PAD = ((CH + 127) // 128) * 128   # pad fused hidden width to a full lane tile

    # ---- wrapper-side weight packing (tiny, one-time; no activation passes) ----------
    # per-tap fused 3x3 weights: (9, C_in, 3*C_out) with columns ordered [head0|head1|head2]
    w1 = jnp.concatenate(
        [jnp.transpose(w, (2, 3, 1, 0)).reshape(9, C, C).astype(jnp.float32)
         for w in w1_list], axis=-1)                               # (9, C, 3C)
    w1 = jnp.pad(w1, ((0, 0), (0, 0), (0, CH_PAD - CH))).astype(jnp.bfloat16)

    b1 = jnp.concatenate([b.astype(jnp.float32) for b in b1_list])
    b1 = jnp.pad(b1, (0, CH_PAD - CH)).reshape(1, CH_PAD)

    # block-diagonal fused 1x1 weights (zero blocks are intentional; negligible FLOPs)
    w2 = jnp.zeros((CH_PAD, OUT), jnp.float32)
    off = 0
    for h, w in enumerate(w2_list):
        w2 = w2.at[h * C:(h + 1) * C, off:off + w.shape[0]].set(
            jnp.transpose(w[:, :, 0, 0], (1, 0)).astype(jnp.float32))
        off += w.shape[0]
    w2 = w2.astype(jnp.bfloat16)
    b2 = jnp.concatenate([b.astype(jnp.float32) for b in b2_list]).reshape(1, OUT)

    # NCHW -> NHWC (channels on lanes). NOTE: no jnp.pad here; halo is built in-kernel.
    x_nhwc = jnp.transpose(x_nchw, (0, 2, 3, 1)).astype(jnp.float32)

    kernel = functools.partial(_centernet_head_kernel, H=H, W=W, C=C, CH_PAD=CH_PAD)
    out = pl.pallas_call(
        kernel,
        out_shape=jax.ShapeDtypeStruct((N, H * W, OUT), jnp.float32),
        grid=(N,),
        in_specs=[
            pl.BlockSpec((1, H, W, C), lambda n: (n, 0, 0, 0)),      # per-image slab
            pl.BlockSpec((9, C, CH_PAD), lambda n: (0, 0, 0)),       # resident weights
            pl.BlockSpec((1, CH_PAD), lambda n: (0, 0)),
            pl.BlockSpec((CH_PAD, OUT), lambda n: (0, 0)),
            pl.BlockSpec((1, OUT), lambda n: (0, 0)),
        ],
        out_specs=pl.BlockSpec((1, H * W, OUT), lambda n: (n, 0, 0)),
        scratch_shapes=[pltpu.VMEM((H + 2, W + 2, C), jnp.float32)],
        compiler_params=pltpu.CompilerParams(
            dimension_semantics=("parallel",),
        ),
    )(x_nhwc, w1, b1, w2, b2)

    # split the packed lane slab back into PyTorch's three NCHW outputs
    out = out.reshape(N, H, W, OUT)
    c0, c1 = out_dims[0], out_dims[0] + out_dims[1]
    heat = jnp.transpose(out[..., :c0], (0, 3, 1, 2))
    wh = jnp.transpose(out[..., c0:c1], (0, 3, 1, 2))
    offset = jnp.transpose(out[..., c1:], (0, 3, 1, 2))
    return heat, wh, offset


if __name__ == "__main__":
    key = jax.random.PRNGKey(0)
    N, C, H, W = 2, 32, 16, 16
    num_classes = 20
    out_dims = (num_classes, 2, 2)

    keys = jax.random.split(key, 1 + 4 * 3)
    x = jax.random.normal(keys[0], (N, C, H, W), jnp.float32)

    # per-head parameters in PyTorch layout (use_bn=False => conv3x3 has a bias; no BN)
    w1_list, b1_list, w2_list, b2_list = [], [], [], []
    for h in range(3):
        k1, k2, k3, k4 = keys[1 + 4 * h: 1 + 4 * (h + 1)]
        w1_list.append(0.05 * jax.random.normal(k1, (C, C, 3, 3), jnp.float32))
        b1_list.append(0.05 * jax.random.normal(k2, (C,), jnp.float32))
        w2_list.append(0.05 * jax.random.normal(k3, (out_dims[h], C, 1, 1), jnp.float32))
        b2_list.append(0.05 * jax.random.normal(k4, (out_dims[h],), jnp.float32))

    outs = centernet_head_forward(x, w1_list, b1_list, w2_list, b2_list)
    outs = jax.block_until_ready(outs)

    # pure-JAX reference (independent of the kernel) to validate semantics
    def ref_head(x, w1, b1, w2, b2):
        y = lax.conv_general_dilated(
            x, w1, (1, 1), ((1, 1), (1, 1)),
            dimension_numbers=("NCHW", "OIHW", "NCHW"),
            precision=lax.Precision.HIGHEST)
        y = jnp.maximum(y + b1[None, :, None, None], 0.0)
        z = lax.conv_general_dilated(
            y, w2, (1, 1), ((0, 0), (0, 0)),
            dimension_numbers=("NCHW", "OIHW", "NCHW"),
            precision=lax.Precision.HIGHEST)
        return z + b2[None, :, None, None]

    # bf16 MXU feed with f32 accumulation -> tolerance loosened vs. the f32 reference
    for h, o in enumerate(outs):
        assert o.shape == (N, out_dims[h], H, W), o.shape
        assert o.dtype == jnp.float32
        assert bool(jnp.all(jnp.isfinite(o)))
        r = ref_head(x, w1_list[h], b1_list[h], w2_list[h], b2_list[h])
        err = float(jnp.max(jnp.abs(o - r)))
        assert bool(jnp.allclose(o, r, atol=2e-2, rtol=2e-2)), err

    print("KERNEL_OK")
</pallas_src>

<mosaic_0001>
module attributes {stable_mosaic.version = 11 : i64} {
  func.func @_centernet_head_kernel(%arg0: i32, %arg1: memref<1x16x16x32xf32, #tpu.memory_space<vmem>>, %arg2: memref<9x32x128xbf16, #tpu.memory_space<vmem>>, %arg3: memref<1x128xf32, #tpu.memory_space<vmem>>, %arg4: memref<128x24xbf16, #tpu.memory_space<vmem>>, %arg5: memref<1x24xf32, #tpu.memory_space<vmem>>, %arg6: memref<1x256x24xf32, #tpu.memory_space<vmem>>, %arg7: memref<18x18x32xf32, #tpu.memory_space<vmem>>) attributes {dimension_semantics = [#tpu.dimension_semantics<parallel>], iteration_bounds = array<i64: 2>, scalar_prefetch = 0 : i64, scratch_operands = 1 : i64, tpu.core_type = #tpu.core_type<tc>, window_params = [{transform_indices = @transform_0, window_bounds = array<i64: 1, 16, 16, 32>}, {pipeline_mode = #tpu.pipeline_mode<synchronous>, transform_indices = @transform_1, window_bounds = array<i64: 9, 32, 128>}, {pipeline_mode = #tpu.pipeline_mode<synchronous>, transform_indices = @transform_2, window_bounds = array<i64: 1, 128>}, {pipeline_mode = #tpu.pipeline_mode<synchronous>, transform_indices = @transform_3, window_bounds = array<i64: 128, 24>}, {pipeline_mode = #tpu.pipeline_mode<synchronous>, transform_indices = @transform_4, window_bounds = array<i64: 1, 24>}, {transform_indices = @transform_5, window_bounds = array<i64: 1, 256, 24>}]} {
    %cst = arith.constant 0.000000e+00 : f32
    %0 = vector.broadcast %cst : f32 to vector<18x18x32xf32>
    %c0 = arith.constant 0 : index
    %c0_0 = arith.constant 0 : index
    %c0_1 = arith.constant 0 : index
    %1 = vector.load %arg7[%c0, %c0_0, %c0_1] : memref<18x18x32xf32, #tpu.memory_space<vmem>>, vector<18x18x32xf32>
    tpu.vector_store %arg7[%c0, %c0_0, %c0_1], %0 {strides = array<i32>} : memref<18x18x32xf32, #tpu.memory_space<vmem>>, vector<18x18x32xf32>,
    %c0_2 = arith.constant 0 : index
    %c0_3 = arith.constant 0 : index
    %c0_4 = arith.constant 0 : index
    %c0_5 = arith.constant 0 : index
    %2 = vector.load %arg1[%c0_2, %c0_3, %c0_4, %c0_5] : memref<1x16x16x32xf32, #tpu.memory_space<vmem>>, vector<1x16x16x32xf32>
    %3 = vector.shape_cast %2 : vector<1x16x16x32xf32> to vector<16x16x32xf32>
    %c1 = arith.constant 1 : index
    %c1_6 = arith.constant 1 : index
    %c0_7 = arith.constant 0 : index
    %4 = vector.load %arg7[%c1, %c1_6, %c0_7] : memref<18x18x32xf32, #tpu.memory_space<vmem>>, vector<16x16x32xf32>
    tpu.vector_store %arg7[%c1, %c1_6, %c0_7], %3 {strides = array<i32>} : memref<18x18x32xf32, #tpu.memory_space<vmem>>, vector<16x16x32xf32>,
    %c0_8 = arith.constant 0 : index
    %c0_9 = arith.constant 0 : index
    %c0_10 = arith.constant 0 : index
    %5 = vector.load %arg7[%c0_8, %c0_9, %c0_10] : memref<18x18x32xf32, #tpu.memory_space<vmem>>, vector<18x18x32xf32>
    %6 = arith.truncf %5 : vector<18x18x32xf32> to vector<18x18x32xbf16>
    %7 = vector.extract_strided_slice %6 {offsets = [0, 0, 0], sizes = [18, 16, 32], strides = [1, 1, 1]} : vector<18x18x32xbf16> to vector<18x16x32xbf16>
    %8 = vector.shape_cast %7 : vector<18x16x32xbf16> to vector<288x32xbf16>
    %9 = vector.extract_strided_slice %6 {offsets = [0, 1, 0], sizes = [18, 16, 32], strides = [1, 1, 1]} : vector<18x18x32xbf16> to vector<18x16x32xbf16>
    %10 = vector.shape_cast %9 : vector<18x16x32xbf16> to vector<288x32xbf16>
    %11 = vector.extract_strided_slice %6 {offsets = [0, 2, 0], sizes = [18, 16, 32], strides = [1, 1, 1]} : vector<18x18x32xbf16> to vector<18x16x32xbf16>
    %12 = vector.shape_cast %11 : vector<18x16x32xbf16> to vector<288x32xbf16>
    %cst_11 = arith.constant 0.000000e+00 : f32
    %13 = vector.broadcast %cst_11 : f32 to vector<256x128xf32>
    %14 = vector.extract_strided_slice %8 {offsets = [0, 0], sizes = [256, 32], strides = [1, 1]} : vector<288x32xbf16> to vector<256x32xbf16>
    %c0_12 = arith.constant 0 : index
    %c0_13 = arith.constant 0 : index
    %c0_14 = arith.constant 0 : index
    %15 = vector.load %arg2[%c0_12, %c0_13, %c0_14] : memref<9x32x128xbf16, #tpu.memory_space<vmem>>, vector<1x32x128xbf16>
    %16 = vector.shape_cast %15 : vector<1x32x128xbf16> to vector<32x128xbf16>
    %cst_15 = arith.constant dense<0.000000e+00> : vector<256x128xf32>
    %17 = tpu.matmul %14, %16, %cst_15 {dimension_numbers = #tpu.dot_dimension_numbers<[1], [0], [0], [1], [0, 0, 1, 1], [], []>} : vector<256x32xbf16>, vector<32x128xbf16>, vector<256x128xf32> -> vector<256x128xf32>
    %18 = arith.addf %13, %17 : vector<256x128xf32>
    %19 = vector.extract_strided_slice %10 {offsets = [0, 0], sizes = [256, 32], strides = [1, 1]} : vector<288x32xbf16> to vector<256x32xbf16>
    %c1_16 = arith.constant 1 : index
    %c0_17 = arith.constant 0 : index
    %c0_18 = arith.constant 0 : index
    %20 = vector.load %arg2[%c1_16, %c0_17, %c0_18] : memref<9x32x128xbf16, #tpu.memory_space<vmem>>, vector<1x32x128xbf16>
    %21 = vector.shape_cast %20 : vector<1x32x128xbf16> to vector<32x128xbf16>
    %cst_19 = arith.constant dense<0.000000e+00> : vector<256x128xf32>
    %22 = tpu.matmul %19, %21, %cst_19 {dimension_numbers = #tpu.dot_dimension_numbers<[1], [0], [0], [1], [0, 0, 1, 1], [], []>} : vector<256x32xbf16>, vector<32x128xbf16>, vector<256x128xf32> -> vector<256x128xf32>
    %23 = arith.addf %18, %22 : vector<256x128xf32>
    %24 = vector.extract_strided_slice %12 {offsets = [0, 0], sizes = [256, 32], strides = [1, 1]} : vector<288x32xbf16> to vector<256x32xbf16>
    %c2 = arith.constant 2 : index
    %c0_20 = arith.constant 0 : index
    %c0_21 = arith.constant 0 : index
    %25 = vector.load %arg2[%c2, %c0_20, %c0_21] : memref<9x32x128xbf16, #tpu.memory_space<vmem>>, vector<1x32x128xbf16>
    %26 = vector.shape_cast %25 : vector<1x32x128xbf16> to vector<32x128xbf16>
    %cst_22 = arith.constant dense<0.000000e+00> : vector<256x128xf32>
    %27 = tpu.matmul %24, %26, %cst_22 {dimension_numbers = #tpu.dot_dimension_numbers<[1], [0], [0], [1], [0, 0, 1, 1], [], []>} : vector<256x32xbf16>, vector<32x128xbf16>, vector<256x128xf32> -> vector<256x128xf32>
    %28 = arith.addf %23, %27 : vector<256x128xf32>
    %29 = vector.extract_strided_slice %8 {offsets = [16, 0], sizes = [256, 32], strides = [1, 1]} : vector<288x32xbf16> to vector<256x32xbf16>
    %c3 = arith.constant 3 : index
    %c0_23 = arith.constant 0 : index
    %c0_24 = arith.constant 0 : index
    %30 = vector.load %arg2[%c3, %c0_23, %c0_24] : memref<9x32x128xbf16, #tpu.memory_space<vmem>>, vector<1x32x128xbf16>
    %31 = vector.shape_cast %30 : vector<1x32x128xbf16> to vector<32x128xbf16>
    %cst_25 = arith.constant dense<0.000000e+00> : vector<256x128xf32>
    %32 = tpu.matmul %29, %31, %cst_25 {dimension_numbers = #tpu.dot_dimension_numbers<[1], [0], [0], [1], [0, 0, 1, 1], [], []>} : vector<256x32xbf16>, vector<32x128xbf16>, vector<256x128xf32> -> vector<256x128xf32>
    %33 = arith.addf %28, %32 : vector<256x128xf32>
    %34 = vector.extract_strided_slice %10 {offsets = [16, 0], sizes = [256, 32], strides = [1, 1]} : vector<288x32xbf16> to vector<256x32xbf16>
    %c4 = arith.constant 4 : index
    %c0_26 = arith.constant 0 : index
    %c0_27 = arith.constant 0 : index
    %35 = vector.load %arg2[%c4, %c0_26, %c0_27] : memref<9x32x128xbf16, #tpu.memory_space<vmem>>, vector<1x32x128xbf16>
    %36 = vector.shape_cast %35 : vector<1x32x128xbf16> to vector<32x128xbf16>
    %cst_28 = arith.constant dense<0.000000e+00> : vector<256x128xf32>
    %37 = tpu.matmul %34, %36, %cst_28 {dimension_numbers = #tpu.dot_dimension_numbers<[1], [0], [0], [1], [0, 0, 1, 1], [], []>} : vector<256x32xbf16>, vector<32x128xbf16>, vector<256x128xf32> -> vector<256x128xf32>
    %38 = arith.addf %33, %37 : vector<256x128xf32>
    %39 = vector.extract_strided_slice %12 {offsets = [16, 0], sizes = [256, 32], strides = [1, 1]} : vector<288x32xbf16> to vector<256x32xbf16>
    %c5 = arith.constant 5 : index
    %c0_29 = arith.constant 0 : index
    %c0_30 = arith.constant 0 : index
    %40 = vector.load %arg2[%c5, %c0_29, %c0_30] : memref<9x32x128xbf16, #tpu.memory_space<vmem>>, vector<1x32x128xbf16>
    %41 = vector.shape_cast %40 : vector<1x32x128xbf16> to vector<32x128xbf16>
    %cst_31 = arith.constant dense<0.000000e+00> : vector<256x128xf32>
    %42 = tpu.matmul %39, %41, %cst_31 {dimension_numbers = #tpu.dot_dimension_numbers<[1], [0], [0], [1], [0, 0, 1, 1], [], []>} : vector<256x32xbf16>, vector<32x128xbf16>, vector<256x128xf32> -> vector<256x128xf32>
    %43 = arith.addf %38, %42 : vector<256x128xf32>
    %44 = vector.extract_strided_slice %8 {offsets = [32, 0], sizes = [256, 32], strides = [1, 1]} : vector<288x32xbf16> to vector<256x32xbf16>
    %c6 = arith.constant 6 : index
    %c0_32 = arith.constant 0 : index
    %c0_33 = arith.constant 0 : index
    %45 = vector.load %arg2[%c6, %c0_32, %c0_33] : memref<9x32x128xbf16, #tpu.memory_space<vmem>>, vector<1x32x128xbf16>
    %46 = vector.shape_cast %45 : vector<1x32x128xbf16> to vector<32x128xbf16>
    %cst_34 = arith.constant dense<0.000000e+00> : vector<256x128xf32>
    %47 = tpu.matmul %44, %46, %cst_34 {dimension_numbers = #tpu.dot_dimension_numbers<[1], [0], [0], [1], [0, 0, 1, 1], [], []>} : vector<256x32xbf16>, vector<32x128xbf16>, vector<256x128xf32> -> vector<256x128xf32>
    %48 = arith.addf %43, %47 : vector<256x128xf32>
    %49 = vector.extract_strided_slice %10 {offsets = [32, 0], sizes = [256, 32], strides = [1, 1]} : vector<288x32xbf16> to vector<256x32xbf16>
    %c7 = arith.constant 7 : index
    %c0_35 = arith.constant 0 : index
    %c0_36 = arith.constant 0 : index
    %50 = vector.load %arg2[%c7, %c0_35, %c0_36] : memref<9x32x128xbf16, #tpu.memory_space<vmem>>, vector<1x32x128xbf16>
    %51 = vector.shape_cast %50 : vector<1x32x128xbf16> to vector<32x128xbf16>
    %cst_37 = arith.constant dense<0.000000e+00> : vector<256x128xf32>
    %52 = tpu.matmul %49, %51, %cst_37 {dimension_numbers = #tpu.dot_dimension_numbers<[1], [0], [0], [1], [0, 0, 1, 1], [], []>} : vector<256x32xbf16>, vector<32x128xbf16>, vector<256x128xf32> -> vector<256x128xf32>
    %53 = arith.addf %48, %52 : vector<256x128xf32>
    %54 = vector.extract_strided_slice %12 {offsets = [32, 0], sizes = [256, 32], strides = [1, 1]} : vector<288x32xbf16> to vector<256x32xbf16>
    %c8 = arith.constant 8 : index
    %c0_38 = arith.constant 0 : index
    %c0_39 = arith.constant 0 : index
    %55 = vector.load %arg2[%c8, %c0_38, %c0_39] : memref<9x32x128xbf16, #tpu.memory_space<vmem>>, vector<1x32x128xbf16>
    %56 = vector.shape_cast %55 : vector<1x32x128xbf16> to vector<32x128xbf16>
    %cst_40 = arith.constant dense<0.000000e+00> : vector<256x128xf32>
    %57 = tpu.matmul %54, %56, %cst_40 {dimension_numbers = #tpu.dot_dimension_numbers<[1], [0], [0], [1], [0, 0, 1, 1], [], []>} : vector<256x32xbf16>, vector<32x128xbf16>, vector<256x128xf32> -> vector<256x128xf32>
    %58 = arith.addf %53, %57 : vector<256x128xf32>
    %c0_41 = arith.constant 0 : index
    %c0_42 = arith.constant 0 : index
    %59 = vector.load %arg3[%c0_41, %c0_42] : memref<1x128xf32, #tpu.memory_space<vmem>>, vector<1x128xf32>
    %60 = vector.broadcast %59 : vector<1x128xf32> to vector<256x128xf32>
    %61 = arith.addf %58, %60 : vector<256x128xf32>
    %cst_43 = arith.constant 0.000000e+00 : f32
    %62 = vector.broadcast %cst_43 : f32 to vector<256x128xf32>
    %63 = arith.maximumf %61, %62 : vector<256x128xf32>
    %64 = arith.truncf %63 : vector<256x128xf32> to vector<256x128xbf16>
    %c0_44 = arith.constant 0 : index
    %c0_45 = arith.constant 0 : index
    %65 = vector.load %arg4[%c0_44, %c0_45] : memref<128x24xbf16, #tpu.memory_space<vmem>>, vector<128x24xbf16>
    %cst_46 = arith.constant dense<0.000000e+00> : vector<256x24xf32>
    %66 = tpu.matmul %64, %65, %cst_46 {dimension_numbers = #tpu.dot_dimension_numbers<[1], [0], [0], [1], [0, 0, 1, 1], [], []>} : vector<256x128xbf16>, vector<128x24xbf16>, vector<256x24xf32> -> vector<256x24xf32>
    %c0_47 = arith.constant 0 : index
    %c0_48 = arith.constant 0 : index
    %67 = vector.load %arg5[%c0_47, %c0_48] : memref<1x24xf32, #tpu.memory_space<vmem>>, vector<1x24xf32>
    %68 = vector.broadcast %67 : vector<1x24xf32> to vector<256x24xf32>
    %69 = arith.addf %66, %68 : vector<256x24xf32>
    %c0_49 = arith.constant 0 : index
    %c0_50 = arith.constant 0 : index
    %c0_51 = arith.constant 0 : index
    %70 = vector.load %arg6[%c0_49, %c0_50, %c0_51] : memref<1x256x24xf32, #tpu.memory_space<vmem>>, vector<1x256x24xf32>
    %71 = vector.shape_cast %70 : vector<1x256x24xf32> to vector<256x24xf32>
    %72 = vector.shape_cast %69 : vector<256x24xf32> to vector<1x256x24xf32>
    tpu.vector_store %arg6[%c0_49, %c0_50, %c0_51], %72 {strides = array<i32>} : memref<1x256x24xf32, #tpu.memory_space<vmem>>, vector<1x256x24xf32>,
    return
  }
  func.func @transform_0(%arg0: i32) -> (i32, i32, i32, i32) {
    %c0_i32 = arith.constant 0 : i32
    %c0_i32_0 = arith.constant 0 : i32
    %c0_i32_1 = arith.constant 0 : i32
    %c0_i32_2 = arith.constant 0 : i32
    return %arg0, %c0_i32, %c0_i32_0, %c0_i32_1 : i32, i32, i32, i32
  }
  func.func @transform_1(%arg0: i32) -> (i32, i32, i32) {
    %c0_i32 = arith.constant 0 : i32
    %c0_i32_0 = arith.constant 0 : i32
    %c0_i32_1 = arith.constant 0 : i32
    %c0_i32_2 = arith.constant 0 : i32
    return %c0_i32, %c0_i32_0, %c0_i32_1 : i32, i32, i32
  }
  func.func @transform_2(%arg0: i32) -> (i32, i32) {
    %c0_i32 = arith.constant 0 : i32
    %c0_i32_0 = arith.constant 0 : i32
    %c0_i32_1 = arith.constant 0 : i32
    return %c0_i32, %c0_i32_0 : i32, i32
  }
  func.func @transform_3(%arg0: i32) -> (i32, i32) {
    %c0_i32 = arith.constant 0 : i32
    %c0_i32_0 = arith.constant 0 : i32
    %c0_i32_1 = arith.constant 0 : i32
    return %c0_i32, %c0_i32_0 : i32, i32
  }
  func.func @transform_4(%arg0: i32) -> (i32, i32) {
    %c0_i32 = arith.constant 0 : i32
    %c0_i32_0 = arith.constant 0 : i32
    %c0_i32_1 = arith.constant 0 : i32
    return %c0_i32, %c0_i32_0 : i32, i32
  }
  func.func @transform_5(%arg0: i32) -> (i32, i32, i32) {
    %c0_i32 = arith.constant 0 : i32
    %c0_i32_0 = arith.constant 0 : i32
    %c0_i32_1 = arith.constant 0 : i32
    return %arg0, %c0_i32, %c0_i32_0 : i32, i32, i32
  }
}

</mosaic_0001>

<bundles_post_ra>
// kernel: tpu_custom_call.1
= control target key start
LH: loop header
LB: loop body
LE: loop exit
PB: predicated region body
PF: predicated region fallthrough
CT: control target
= control target key end

     0   :  { %10 = vsyncpa [#allocation4], 0  ;;  %s5626_s0 = inlined_call_operand.hbm [shape: f32[2,16,16,32], index: 0, kind: input, shape index: {}]   ;;  %s5627_s1 = inlined_call_operand.hbm [shape: bf16[9,32,128], index: 1, kind: input, shape index: {}]   ;;  %s5628_s2 = inlined_call_operand.vmem [shape: f32[1,128], index: 2, kind: input, shape index: {}]   ;;  %s5629_s3 = inlined_call_operand.vmem [shape: bf16[128,24], index: 3, kind: input, shape index: {}]   ;;  %s5630_s4 = inlined_call_operand.vmem [shape: f32[1,24], index: 4, kind: input, shape index: {}]   ;;  %s5631_s5 = inlined_call_operand.vmem [shape: f32[2,256,24], index: 5, kind: output, shape index: {}]  }
   0x1   :  { %12 = vsyncpa [#allocation4 + $0x1], 0 }
   0x2   :  { %13 = vsyncpa [#allocation6], 0  ;;  %s4136_s18 = smov 0   ;;  %s4138_s19 = smov 0  }
   0x3   :  { %s4140_s20 = smov 0   ;;  %s4142_s21 = smov 0  }
   0x4 LB: > { %s4155_s22 = sadd.s32 4294967295, %s4097_s21   ;;  %p39_p0 = scmp.ne.s32.totalorder %s4089_s19, %s4085_s18  ;;  %s4097_s21 = sphi %s4142_s21, %s5706_s21   ;;  %s4093_s20 = sphi %s4140_s20, %s5705_s20   ;;  %s4089_s19 = sphi %s4138_s19, %s5704_s19   ;;  %s4085_s18 = sphi %s4136_s18, %s5703_s18  }
   0x5   : > { %p5632_p1 = scmp.eq.s32.totalorder %s4155_s22, 0  ;;  %p3179_p2 = scmp.ge.s32.totalorder %s4097_s21, 1 }
   0x6   : > { %p160_p3 = scmp.lt.s32.totalorder %s4097_s21, 3  ;;  %s4099_s25 = smov [#allocation5]  }
   0x7   : > { %p4163_p4 = por %p5632_p1, %p39_p0  ;;  %s172_s26 = sshll.u32 %s4099_s25, 4  ;;  %s173_s26 = int_to_ptr.vmem [resolvable:$true] %s172_s26 }
   0x8   : > { %p4167_p5 = pnand %p3179_p2, %p160_p3  ;;  %s4180_s28 = sadd.s32 1, %s4097_s21  }
   0x9   : > { %s5635_s23 = scalar_select %p4163_p4, 1, 0 }
   0xa   : > { %s5636_s24 = scalar_select %p4167_p5, 1, 0 }
   0xb   : > { %p3930_p6 = pneg %p4167_p5  ;;  %s26_s29 = sadd.s32 1, %s4093_s20 }
   0xc   : > { %s23_s30 = ssub.s32 %s4097_s21, %s4180_s28  ;;  %s4016_s6 = scalar_lea.vmem %s173_s26, 2304 }
   0xd   : > { %p4175_p7 = pnand %p3930_p6, %p5632_p1  ;;  %p4017_p9 = scmp.ne.s32.totalorder %s173_s26, %s4016_s6 }
   0xe   : > { %p4024_p12 = scmp.lt.s32.totalorder %s173_s26, %s173_s26  ;;  %p4025_p13 = scmp.lt.s32.totalorder %s4016_s6, %s4016_s6 }
   0xf   : > { %p4007_p8 = pneg %p4175_p7 }
  0x10   : > { %p4026_p0 = por %p4025_p13, %p4024_p12 }
  0x11   : > { %p4019_p10 = pnand %p4017_p9, %p4007_p8 }
  0x13   : > { %p4020_p11 = pneg %p4019_p10 }
  0x15   : > { %p4027_p2 = pnand %p4026_p0, %p4020_p11 }
  0x17   : > { %4030 = shalt.err (!%p4027_p2)
}
  0x18   : > { %s4100_s7 = smov 64   ;;  %s4101_s8 = smov 4  }
  0x19   : > { %3933 = dma.hbm_to_vmem [thread:$0]  (!%p4175_p7), %s5627_s1, 2304, %s173_s26, [#allocation6], %s4100_s7, %s4100_s7, %s4101_s8  }
  0x1a   : > { %p24_p3 = scmp.eq.s32.totalorder %s23_s30, 0  ;;  %p33_p6 = scmp.ne.s32.totalorder %s4093_s20, %s4089_s19 }
  0x1b   : > { %p34_p8 = scmp.eq.s32.totalorder %s4097_s21, 0  ;;  %p3939_p9 = scmp.lt.s32.totalorder %s4097_s21, 2 }
  0x1c   : > { %s4197_s11 = scalar_select %p24_p3, %s4093_s20, %s26_s29  }
  0x1d   : > { %p35_p10 = por %p34_p8, %p33_p6  ;;  %s195_s12 = sand.u32 1, %s4093_s20  }
  0x1e   : > { %s3182_s13 = sshll.u32 %s195_s12, 8  ;;  %s3364_s14 = sshll.u32 %s4097_s21, 12 }
  0x1f   : > { %s4204_s17 = scalar_lea.hbm %s5626_s0, %s3364_s14  ;;  %s199_s18 = scalar_lea.vmem [#allocation3], %s3182_s13 }
  0x20   : > { %s206_s25 = sshll.u32 %s199_s18, 4  ;;  %p4208_p7 = pnand %p3939_p9, %p35_p10  ;;  %s4206_s25 = int_to_ptr.vmem [resolvable:$true] %s206_s25 }
  0x21   : > { %s4212_s27 = scalar_lea.sflag [#allocation4], %s195_s12  ;;  %s4031_s21 = scalar_lea.hbm %s4204_s17, 4096 }
  0x22   : > { %p4032_p11 = scmp.ne.s32.totalorder %s4204_s17, %s4031_s21  ;;  %p4033_p12 = pneg %p4208_p7 }
  0x23   : > { %s4036_s6 = scalar_lea.hbm %s5626_s0, 8192  ;;  %p4037_p2 = scmp.lt.s32.totalorder %s4204_s17, %s5626_s0 }
  0x24   : > { %p4034_p13 = pnand %p4033_p12, %p4032_p11  ;;  %p4038_p3 = scmp.lt.s32.totalorder %s4036_s6, %s4031_s21 }
  0x26   : > { %p4035_p0 = pneg %p4034_p13  ;;  %p4039_p6 = por %p4038_p3, %p4037_p2 }
  0x28   : > { %p4040_p8 = pnand %p4039_p6, %p4035_p0 }
  0x2a   : > { %4043 = shalt.err (!%p4040_p8)
}
  0x2b   : > { %s4044_s9 = scalar_lea.vmem %s4206_s25, 4096  ;;  %s4102_s10 = smov [#allocation3]  }
  0x2c   : > { %p4045_p9 = scmp.ne.s32.totalorder %s4206_s25, %s4044_s9  ;;  %s4049_s12 = sshll.u32 %s4102_s10, 4  ;;  %s4050_s12 = int_to_ptr.vmem [resolvable:$false] %s4049_s12 }
  0x2d   : > { %s4051_s13 = scalar_lea.vmem %s4050_s12, 8192  ;;  %p4052_p13 = scmp.lt.s32.totalorder %s4206_s25, %s4050_s12 }
  0x2e   : > { %p4047_p10 = pnand %p4045_p9, %p4033_p12  ;;  %p4053_p1 = scmp.lt.s32.totalorder %s4051_s13, %s4044_s9 }
  0x30   : > { %p4048_p11 = pneg %p4047_p10  ;;  %p4054_p4 = por %p4053_p1, %p4052_p13 }
  0x32   : > { %p4055_p5 = pnand %p4054_p4, %p4048_p11 }
  0x34   : > { %4058 = shalt.err (!%p4055_p5)
}
  0x35   : > { %s4103_s14 = smov 128   ;;  %s4104_s15 = smov 8  }
  0x36   : > { %3937 = dma.hbm_to_vmem [thread:$0]  (!%p4208_p7), %s4204_s17, 4096, %s4206_s25, %s4212_s27, %s4103_s14, %s4103_s14, %s4104_s15  }
  0x37   : > { %p5639_p12 = scmp.ne.s32.totalorder %s5636_s24, 0 }
  0x39   : > { %218 = sbr.rel (%p5639_p12) target bundleno = 837 (0x345), region = 40 }
  0x3e   : > { %s220_s16 = sand.u32 1, %s4089_s19   ;;  %p5640_p1 = scmp.ne.s32.totalorder %s5635_s23, 0 }
  0x3f   : > { %s3186_s18 = sshll.u32 %s220_s16, 8  ;;  %s221_s21 = scalar_lea.sflag [#allocation4], %s220_s16 }
  0x40   : > { %s4236_s29 = scalar_lea.vmem [#allocation3], %s3186_s18 }
  0x41   : > { %4076 = dma.done.wait (%p5640_p1), %s221_s21, 4096  }
  0x42   : > { %4078 = vsyncadd (%p5640_p1), %s221_s21, 4294963200  ;;  %p5641_p4 = scmp.eq.s32.totalorder %s4155_s22, 0 }
  0x44   : > { %4080 = dma.done.wait (%p5641_p4), [#allocation6], 2304   ;;  %p5642_p5 = pmov %p5641_p4 }
  0x45   : > { %vm261_vm0 = vcmask 261120   ;;  %vm264_vm1 = vcmask 254976   ;;  %v4105_v0 = vmov 0.0   ;;  %v3979_v1 = vld [vmem:[#allocation5 + $0x18] sm:$0xff]   ;;  %v3980_v2 = vld [vmem:[#allocation5 + $0x8] sm:$0xff]   ;;  %v3981_v3 = vld [vmem:[#allocation5 + $0x10] sm:$0xff]  }
  0x46   : > { %4082 = vsyncadd (%p5642_p5), [#allocation6], 4294964992  ;;  %262 = vst.msk [vmem:[#allocation2] sm:$0xff] %vm261_vm0, %v4105_v0  ;;  %3552 = vmatprep.subr.bf16.mxu0 %v3979_v1  ;;  %3588 = vmatprep.subr.bf16.mxu1 %v3980_v2  ;;  %v3982_v4 = vld [vmem:[#allocation5] sm:$0xff]   ;;  %v4300_v10 = vld [vmem:[#allocation5 + $0x28] sm:$0xff]   ;;  %vm725_vm2 = vcmask 1046528  }
  0x47   : > { %263 = vst.msk [vmem:[#allocation2 + $0x8] sm:$0xff] %vm261_vm0, %v4105_v0  ;;  %266 = vst.msk [vmem:[#allocation2 + $0x18] sm:$0xff] %vm261_vm0, %v4105_v0  ;;  %3553 = vmatpush3.bf16.msra.mxu0 %v3979_v1  ;;  %3589 = vmatpush3.bf16.msra.mxu1 %v3980_v2  ;;  %v317_v11 = vld [vmem:[%s4236_s29] sm:$0xff]  ;;  %v318_v12 = vld [vmem:[%s4236_s29 + $0x8] sm:$0xff]  ;;  %vm472_vm3 = vsmask.f32 7424 }
  0x48   : > { %265 = vst.msk [vmem:[#allocation2 + $0x10] sm:$0x3] %vm264_vm1, %v4105_v0  ;;  %268 = vst.msk [vmem:[#allocation2 + $0x28] sm:$0x3] %vm264_vm1, %v4105_v0  ;;  %3554 = vmatprep.subr.bf16.mxu0 %v3981_v3  ;;  %3590 = vmatprep.subr.bf16.mxu1 %v3982_v4  ;;  %v319_v13 = vld [vmem:[%s4236_s29 + $0x10] sm:$0xff]  ;;  %v320_v17 = vld [vmem:[%s4236_s29 + $0x18] sm:$0xff] }
  0x49   : > { %267 = vst.msk [vmem:[#allocation2 + $0x20] sm:$0xff] %vm261_vm0, %v4105_v0  ;;  %269 = vst.msk [vmem:[#allocation2 + $0x30] sm:$0xff] %vm261_vm0, %v4105_v0  ;;  %v321_v18 = vld [vmem:[%s4236_s29 + $0x20] sm:$0xff]  ;;  %v322_v19 = vld [vmem:[%s4236_s29 + $0x28] sm:$0xff]  ;;  %p255_p7 = scmp.lt.s32.totalorder %s4155_s22, 1  ;;  %vm3068_vm4 = vcmask 195584  }
  0x4a   : > { %270 = vst.msk [vmem:[#allocation2 + $0x38] sm:$0xff] %vm261_vm0, %v4105_v0  ;;  %272 = vst.msk [vmem:[#allocation2 + $0x48] sm:$0xff] %vm261_vm0, %v4105_v0  ;;  %v323_v20 = vld [vmem:[%s4236_s29 + $0x30] sm:$0xff]  ;;  %v324_v21 = vld [vmem:[%s4236_s29 + $0x38] sm:$0xff] }
  0x4b   : > { %271 = vst.msk [vmem:[#allocation2 + $0x40] sm:$0x3] %vm264_vm1, %v4105_v0  ;;  %274 = vst.msk [vmem:[#allocation2 + $0x58] sm:$0x3] %vm264_vm1, %v4105_v0  ;;  %3555 = vmatpush3.bf16.msra.mxu0 %v3981_v3  ;;  %3591 = vmatpush3.bf16.msra.mxu1 %v3982_v4  ;;  %v325_v22 = vld [vmem:[%s4236_s29 + $0x40] sm:$0xff]  ;;  %v326_v27 = vld [vmem:[%s4236_s29 + $0x48] sm:$0xff] }
  0x4c   : > { %273 = vst.msk [vmem:[#allocation2 + $0x50] sm:$0xff] %vm261_vm0, %v4105_v0  ;;  %275 = vst.msk [vmem:[#allocation2 + $0x60] sm:$0xff] %vm261_vm0, %v4105_v0  ;;  %3624 = vmatprep.subr.bf16.mxu0 %v4300_v10  ;;  %v327_v28 = vld [vmem:[%s4236_s29 + $0x50] sm:$0xff]  ;;  %v328_v29 = vld [vmem:[%s4236_s29 + $0x58] sm:$0xff]  ;;  %s5708_s22 = smov (!%p255_p7, %s4155_s22), 1 }
  0x4d   : > { %276 = vst.msk [vmem:[#allocation2 + $0x68] sm:$0xff] %vm261_vm0, %v4105_v0  ;;  %278 = vst.msk [vmem:[#allocation2 + $0x78] sm:$0xff] %vm261_vm0, %v4105_v0  ;;  %v382_v5 = vld [vmem:[#allocation2] sm:$0xff]  ;;  %v329_v30 = vld [vmem:[%s4236_s29 + $0x60] sm:$0xff]  ;;  %s3365_s21 = sshll.u32 %s5708_s22, 8 }
  0x4e   : > { %277 = vst.msk [vmem:[#allocation2 + $0x70] sm:$0x3] %vm264_vm1, %v4105_v0  ;;  %280 = vst.msk [vmem:[#allocation2 + $0x88] sm:$0x3] %vm264_vm1, %v4105_v0  ;;  %v383_v6 = vld [vmem:[#allocation2 + $0x8] sm:$0xff]  ;;  %v330_v31 = vld [vmem:[%s4236_s29 + $0x68] sm:$0xff]  ;;  %s5515_s25 = scalar_lea.vmem %s5631_s5, %s3365_s21 }
  0x4f   : > { %279 = vst.msk [vmem:[#allocation2 + $0x80] sm:$0xff] %vm261_vm0, %v4105_v0  ;;  %281 = vst.msk [vmem:[#allocation2 + $0x90] sm:$0xff] %vm261_vm0, %v4105_v0  ;;  %v384_v7 = vld [vmem:[#allocation2 + $0x10] sm:$0x3]  ;;  %v436_v8 = vpack.c.bf16 %v383_v6, %v382_v5  ;;  %v331_v32 = vld [vmem:[%s4236_s29 + $0x70] sm:$0xff] }
  0x50   : > { %282 = vst.msk [vmem:[#allocation2 + $0x98] sm:$0xff] %vm261_vm0, %v4105_v0  ;;  %284 = vst.msk [vmem:[#allocation2 + $0xa8] sm:$0xff] %vm261_vm0, %v4105_v0  ;;  %v437_v9 = vpack.c.bf16 %v384_v7, %v384_v7  ;;  %v332_v35 = vld [vmem:[%s4236_s29 + $0x78] sm:$0xff]  ;;  %v333_v36 = vld [vmem:[%s4236_s29 + $0x80] sm:$0xff] }
  0x51   : > { %283 = vst.msk [vmem:[#allocation2 + $0xa0] sm:$0x3] %vm264_vm1, %v4105_v0  ;;  %286 = vst.msk [vmem:[#allocation2 + $0xb8] sm:$0x3] %vm264_vm1, %v4105_v0  ;;  %v474_v14 = vshrl.u32 %v436_v8, 16  ;;  %v476_v15 = vshll.u32 %v436_v8, 16  ;;  %3592 = vmatprep.mubr.msk.bf16.mxu1 %vm261_vm0, %v436_v8 }
  0x52   : > { %285 = vst.msk [vmem:[#allocation2 + $0xb0] sm:$0xff] %vm261_vm0, %v4105_v0  ;;  %287 = vst.msk [vmem:[#allocation2 + $0xc0] sm:$0xff] %vm261_vm0, %v4105_v0  ;;  %v481_v16 = vshll.u32 %v437_v9, 16  ;;  %v726_v23 = vrot.slane %v436_v8, 1  ;;  %v727_v24 = vrot.slane %v437_v9, 1  ;;  %v334_v37 = vld [vmem:[%s4236_s29 + $0x88] sm:$0xff] }
  0x53   : > { %288 = vst.msk [vmem:[#allocation2 + $0xc8] sm:$0xff] %vm261_vm0, %v4105_v0  ;;  %290 = vst.msk [vmem:[#allocation2 + $0xd8] sm:$0xff] %vm261_vm0, %v4105_v0  ;;  %v478_v25 = vrot.slane %v476_v15, 1  ;;  %v335_v39 = vld [vmem:[%s4236_s29 + $0x90] sm:$0xff]  ;;  %v336_v40 = vld [vmem:[%s4236_s29 + $0x98] sm:$0xff] }
  0x54   : > { %289 = vst.msk [vmem:[#allocation2 + $0xd0] sm:$0x3] %vm264_vm1, %v4105_v0  ;;  %292 = vst.msk [vmem:[#allocation2 + $0xe8] sm:$0x3] %vm264_vm1, %v4105_v0  ;;  %v483_v26 = vrot.slane %v481_v16, 1  ;;  %v4332_v33 = vsel %vm725_vm2, %v726_v23, %v727_v24  ;;  %v337_v41 = vld [vmem:[%s4236_s29 + $0xa0] sm:$0xff] }
  0x55   : > { %291 = vst.msk [vmem:[#allocation2 + $0xe0] sm:$0xff] %vm261_vm0, %v4105_v0  ;;  %293 = vst.msk [vmem:[#allocation2 + $0xf0] sm:$0xff] %vm261_vm0, %v4105_v0  ;;  %v479_v34 = vor.u32 %v478_v25, %v474_v14 }
  0x56   : > { %294 = vst.msk [vmem:[#allocation2 + $0xf8] sm:$0xff] %vm261_vm0, %v4105_v0  ;;  %296 = vst.msk [vmem:[#allocation2 + $0x108] sm:$0xff] %vm261_vm0, %v4105_v0 }
  0x57   : > { %295 = vst.msk [vmem:[#allocation2 + $0x100] sm:$0x3] %vm264_vm1, %v4105_v0  ;;  %298 = vst.msk [vmem:[#allocation2 + $0x118] sm:$0x3] %vm264_vm1, %v4105_v0  ;;  %v484_v38 = vsel %vm472_vm3, %v479_v34, %v483_v26  ;;  %v3984_v26 = vld [vmem:[#allocation5 + $0x20] sm:$0xff]  }
  0x58   : > { %297 = vst.msk [vmem:[#allocation2 + $0x110] sm:$0xff] %vm261_vm0, %v4105_v0  ;;  %299 = vst.msk [vmem:[#allocation2 + $0x120] sm:$0xff] %vm261_vm0, %v4105_v0  ;;  %3556 = vmatprep.mubr.msk.bf16.mxu0 %vm261_vm0, %v484_v38 }
  0x59   : > { %300 = vst.msk [vmem:[#allocation2 + $0x128] sm:$0xff] %vm261_vm0, %v4105_v0  ;;  %302 = vst.msk [vmem:[#allocation2 + $0x138] sm:$0xff] %vm261_vm0, %v4105_v0 }
  0x5a   : > { %301 = vst.msk [vmem:[#allocation2 + $0x130] sm:$0x3] %vm264_vm1, %v4105_v0  ;;  %304 = vst.msk [vmem:[#allocation2 + $0x148] sm:$0x3] %vm264_vm1, %v4105_v0 }
  0x5b   : > { %303 = vst.msk [vmem:[#allocation2 + $0x140] sm:$0xff] %vm261_vm0, %v4105_v0  ;;  %305 = vst.msk [vmem:[#allocation2 + $0x150] sm:$0xff] %vm261_vm0, %v4105_v0 }
  0x5c   : > { %306 = vst.msk [vmem:[#allocation2 + $0x158] sm:$0xff] %vm261_vm0, %v4105_v0  ;;  %308 = vst.msk [vmem:[#allocation2 + $0x168] sm:$0xff] %vm261_vm0, %v4105_v0 }
  0x5d   : > { %307 = vst.msk [vmem:[#allocation2 + $0x160] sm:$0x3] %vm264_vm1, %v4105_v0  ;;  %310 = vst.msk [vmem:[#allocation2 + $0x178] sm:$0x3] %vm264_vm1, %v4105_v0 }
  0x5e   : > { %309 = vst.msk [vmem:[#allocation2 + $0x170] sm:$0xff] %vm261_vm0, %v4105_v0  ;;  %311 = vst.msk [vmem:[#allocation2 + $0x180] sm:$0xff] %vm261_vm0, %v4105_v0 }
  0x5f   : > { %312 = vst.msk [vmem:[#allocation2 + $0x188] sm:$0xff] %vm261_vm0, %v4105_v0  ;;  %314 = vst.msk [vmem:[#allocation2 + $0x198] sm:$0xff] %vm261_vm0, %v4105_v0 }
  0x60   : > { %313 = vst.msk [vmem:[#allocation2 + $0x190] sm:$0x3] %vm264_vm1, %v4105_v0  ;;  %316 = vst.msk [vmem:[#allocation2 + $0x1a8] sm:$0x3] %vm264_vm1, %v4105_v0 }
  0x61   : > { %315 = vst.msk [vmem:[#allocation2 + $0x1a0] sm:$0xff] %vm261_vm0, %v4105_v0  ;;  %350 = vst.msk [vmem:[#allocation2 + $0x19] sm:$0xff] %vm261_vm0, %v317_v11 }
  0x62   : > { %351 = vst.msk [vmem:[#allocation2 + $0x21] sm:$0xff] %vm261_vm0, %v318_v12  ;;  %352 = vst.msk [vmem:[#allocation2 + $0x31] sm:$0xff] %vm261_vm0, %v319_v13 }
  0x63   : > { %353 = vst.msk [vmem:[#allocation2 + $0x39] sm:$0xff] %vm261_vm0, %v320_v17  ;;  %354 = vst.msk [vmem:[#allocation2 + $0x49] sm:$0xff] %vm261_vm0, %v321_v18 }
  0x64   : > { %355 = vst.msk [vmem:[#allocation2 + $0x51] sm:$0xff] %vm261_vm0, %v322_v19  ;;  %356 = vst.msk [vmem:[#allocation2 + $0x61] sm:$0xff] %vm261_vm0, %v323_v20 }
  0x65   : > { %357 = vst.msk [vmem:[#allocation2 + $0x69] sm:$0xff] %vm261_vm0, %v324_v21  ;;  %358 = vst.msk [vmem:[#allocation2 + $0x79] sm:$0xff] %vm261_vm0, %v325_v22 }
  0x66   : > { %359 = vst.msk [vmem:[#allocation2 + $0x81] sm:$0xff] %vm261_vm0, %v326_v27  ;;  %360 = vst.msk [vmem:[#allocation2 + $0x91] sm:$0xff] %vm261_vm0, %v327_v28 }
  0x67   : > { %361 = vst.msk [vmem:[#allocation2 + $0x99] sm:$0xff] %vm261_vm0, %v328_v29  ;;  %362 = vst.msk [vmem:[#allocation2 + $0xa9] sm:$0xff] %vm261_vm0, %v329_v30  ;;  %v338_v30 = vld [vmem:[%s4236_s29 + $0xa8] sm:$0xff] }
  0x68   : > { %363 = vst.msk [vmem:[#allocation2 + $0xb1] sm:$0xff] %vm261_vm0, %v330_v31  ;;  %364 = vst.msk [vmem:[#allocation2 + $0xc1] sm:$0xff] %vm261_vm0, %v331_v32  ;;  %v385_v42 = vld [vmem:[#allocation2 + $0x18] sm:$0xff] }
  0x69   : > { %365 = vst.msk [vmem:[#allocation2 + $0xc9] sm:$0xff] %vm261_vm0, %v332_v35  ;;  %366 = vst.msk [vmem:[#allocation2 + $0xd9] sm:$0xff] %vm261_vm0, %v333_v36  ;;  %v386_v43 = vld [vmem:[#allocation2 + $0x20] sm:$0xff]  ;;  %v387_v44 = vld [vmem:[#allocation2 + $0x28] sm:$0x3] }
  0x6a   : > { %367 = vst.msk [vmem:[#allocation2 + $0xe1] sm:$0xff] %vm261_vm0, %v334_v37  ;;  %368 = vst.msk [vmem:[#allocation2 + $0xf1] sm:$0xff] %vm261_vm0, %v335_v39  ;;  %v4351_v45 = vpack.c.bf16 %v386_v43, %v385_v42  ;;  %v4353_v46 = vpack.c.bf16 %v387_v44, %v387_v44  ;;  %v388_v47 = vld [vmem:[#allocation2 + $0x30] sm:$0xff]  ;;  %v389_v48 = vld [vmem:[#allocation2 + $0x38] sm:$0xff] }
  0x6b   : > { %369 = vst.msk [vmem:[#allocation2 + $0xf9] sm:$0xff] %vm261_vm0, %v336_v40  ;;  %370 = vst.msk [vmem:[#allocation2 + $0x109] sm:$0xff] %vm261_vm0, %v337_v41  ;;  %v390_v49 = vld [vmem:[#allocation2 + $0x40] sm:$0x3]  ;;  %v4355_v50 = vpack.c.bf16 %v389_v48, %v388_v47  ;;  %v391_v52 = vld [vmem:[#allocation2 + $0x48] sm:$0xff] }
  0x6c   : > { %v4357_v51 = vpack.c.bf16 %v390_v49, %v390_v49  ;;  %v392_v53 = vld [vmem:[#allocation2 + $0x50] sm:$0xff]  ;;  %v393_v54 = vld [vmem:[#allocation2 + $0x58] sm:$0x3]  ;;  %v486_v55 = vshrl.u32 %v4351_v45, 16  ;;  %v488_v56 = vshll.u32 %v4351_v45, 16  ;;  %v493_v57 = vshll.u32 %v4353_v46, 16  ;;  %3593 = vmatmul.mubr.msk.bf16.vlgmr.msra.gmra.mxu1 %vm261_vm0, %v4351_v45 }
  0x6d   : > { %v394_v58 = vld [vmem:[#allocation2 + $0x60] sm:$0xff]  ;;  %v395_v59 = vld [vmem:[#allocation2 + $0x68] sm:$0xff]  ;;  %v498_v60 = vshrl.u32 %v4355_v50, 16  ;;  %v500_v61 = vshll.u32 %v4355_v50, 16  ;;  %3596 = vmatprep.mubr.msk.bf16.mxu1 %vm261_vm0, %v4355_v50  ;;  %v4369_v63 = vpack.c.bf16 %v392_v53, %v391_v52  ;;  %v396_v0 = vld [vmem:[#allocation2 + $0x70] sm:$0x3]  ;;  %v4371_v3 = vpack.c.bf16 %v393_v54, %v393_v54 }
  0x6e   : > { %v505_v62 = vshll.u32 %v4357_v51, 16  ;;  %v490_v1 = vrot.slane %v488_v56, 1  ;;  %v495_v2 = vrot.slane %v493_v57, 1  ;;  %v4373_v4 = vpack.c.bf16 %v395_v59, %v394_v58  ;;  %v397_v5 = vld [vmem:[#allocation2 + $0x78] sm:$0xff]  ;;  %v398_v6 = vld [vmem:[#allocation2 + $0x80] sm:$0xff]  ;;  %v400_v21 = vld [vmem:[#allocation2 + $0x90] sm:$0xff] }
  0x6f   : > { %v502_v7 = vrot.slane %v500_v61, 1  ;;  %v510_v9 = vshrl.u32 %v4369_v63, 16  ;;  %v512_v11 = vshll.u32 %v4369_v63, 16  ;;  %v517_v13 = vshll.u32 %v4371_v3, 16  ;;  %v399_v16 = vld [vmem:[#allocation2 + $0x88] sm:$0x3] }
  0x70   : > { %v507_v8 = vrot.slane %v505_v62, 1  ;;  %v491_v12 = vor.u32 %v490_v1, %v486_v55  ;;  %v4378_v14 = vpack.c.bf16 %v396_v0, %v396_v0  ;;  %v522_v15 = vshrl.u32 %v4373_v4, 16  ;;  %v401_v22 = vld [vmem:[#allocation2 + $0x98] sm:$0xff]  ;;  %v402_v25 = vld [vmem:[#allocation2 + $0xa0] sm:$0x3]  ;;  %v403_v36 = vld [vmem:[#allocation2 + $0xa8] sm:$0xff] }
  0x71   : > { %v503_v17 = vor.u32 %v502_v7, %v498_v60  ;;  %v514_v18 = vrot.slane %v512_v11, 1  ;;  %v524_v19 = vshll.u32 %v4373_v4, 16  ;;  %v4382_v20 = vpack.c.bf16 %v398_v6, %v397_v5  ;;  %v404_v37 = vld [vmem:[#allocation2 + $0xb0] sm:$0xff]  ;;  %v406_v38 = vld [vmem:[#allocation2 + $0xc0] sm:$0xff]  ;;  %371 = vst.msk [vmem:[#allocation2 + $0x111] sm:$0xff] %vm261_vm0, %v338_v30  ;;  %v340_v42 = vld [vmem:[%s4236_s29 + $0xb8] sm:$0xff] }
  0x72   : > { %v4385_v23 = vsel %vm472_vm3, %v491_v12, %v495_v2  ;;  %v529_v24 = vshll.u32 %v4378_v14, 16  ;;  %v4393_v29 = vpack.c.bf16 %v399_v16, %v399_v16  ;;  %v519_v32 = vrot.slane %v517_v13, 1  ;;  %v339_v41 = vld [vmem:[%s4236_s29 + $0xb0] sm:$0xff]  ;;  %v341_v43 = vld [vmem:[%s4236_s29 + $0xc0] sm:$0xff]  ;;  %v405_v47 = vld [vmem:[#allocation2 + $0xb8] sm:$0x3] }
  0x73   : > { %3557 = vmatmul.mubr.msk.bf16.vlgmr.msra.gmra.mxu0 %vm261_vm0, %v4385_v23  ;;  %v4391_v27 = vsel %vm472_vm3, %v503_v17, %v507_v8  ;;  %v526_v28 = vrot.slane %v524_v19, 1  ;;  %v515_v31 = vor.u32 %v514_v18, %v510_v9  ;;  %v536_v34 = vshll.u32 %v4382_v20, 16  ;;  %v407_v48 = vld [vmem:[#allocation2 + $0xc8] sm:$0xff]  ;;  %372 = vst.msk [vmem:[#allocation2 + $0x121] sm:$0xff] %vm261_vm0, %v339_v41  ;;  %373 = vst.msk [vmem:[#allocation2 + $0x129] sm:$0xff] %vm261_vm0, %v340_v42  ;;  %v342_v49 = vld [vmem:[%s4236_s29 + $0xc8] sm:$0xff] }
  0x74   : > { %3625 = vmatpush3.bf16.msra.mxu0 %v4300_v10  ;;  %3560 = vmatprep.mubr.msk.bf16.mxu0 %vm261_vm0, %v4391_v27  ;;  %v4400_v35 = vpack.c.bf16 %v401_v22, %v400_v21  ;;  %v531_v39 = vrot.slane %v529_v24, 1  ;;  %v4405_v40 = vpack.c.bf16 %v402_v25, %v402_v25  ;;  %374 = vst.msk [vmem:[#allocation2 + $0x139] sm:$0xff] %vm261_vm0, %v341_v43  ;;  %v343_v52 = vld [vmem:[%s4236_s29 + $0xd0] sm:$0xff]  ;;  %v534_v53 = vshrl.u32 %v4382_v20, 16  ;;  %v344_v56 = vld [vmem:[%s4236_s29 + $0xd8] sm:$0xff]  ;;  %v345_v57 = vld [vmem:[%s4236_s29 + $0xe0] sm:$0xff] }
  0x75   : > { %3597 = vmatmul.mubr.msk.bf16.gmra.mxu1 %vm261_vm0, %v4369_v63  ;;  %v527_v10 = vor.u32 %v526_v28, %v522_v15  ;;  %3626 = vmatprep.subr.bf16.mxu0 %v3984_v26  ;;  %v541_v54 = vshll.u32 %v4393_v29, 16  ;;  %v4420_v55 = vpack.c.bf16 %v404_v37, %v403_v36  ;;  %375 = vst.msk [vmem:[#allocation2 + $0x141] sm:$0xff] %vm261_vm0, %v342_v49  ;;  %376 = vst.msk [vmem:[#allocation2 + $0x151] sm:$0xff] %vm261_vm0, %v343_v52  ;;  %v346_v58 = vld [vmem:[%s4236_s29 + $0xe8] sm:$0xff]  ;;  %v3985_v5 = vld [vmem:[#allocation5 + $0x38] sm:$0xff]  }
  0x76   : > { %3600 = vmatprep.mubr.msk.bf16.mxu1 %vm261_vm0, %v4373_v4  ;;  %v548_v44 = vshll.u32 %v4400_v35, 16  ;;  %v4428_v59 = vsel %vm472_vm3, %v515_v31, %v519_v32  ;;  %v538_v60 = vrot.slane %v536_v34, 1  ;;  %v546_v61 = vshrl.u32 %v4400_v35, 16  ;;  %377 = vst.msk [vmem:[#allocation2 + $0x159] sm:$0xff] %vm261_vm0, %v344_v56  ;;  %378 = vst.msk [vmem:[#allocation2 + $0x169] sm:$0xff] %vm261_vm0, %v345_v57  ;;  %v3986_v6 = vld [vmem:[#allocation5 + $0x30] sm:$0xff]   ;;  %3660 = vmatprep.subr.bf16.mxu1 %v3985_v5 }
  0x77   : > { %379 = vst.msk [vmem:[#allocation2 + $0x171] sm:$0xff] %vm261_vm0, %v346_v58  ;;  %v4435_v62 = vsel %vm472_vm3, %v527_v10, %v531_v39  ;;  %v553_v1 = vshll.u32 %v4405_v40, 16  ;;  %v4438_v2 = vpack.c.bf16 %v407_v48, %v406_v38  ;;  %v408_v7 = vld [vmem:[#allocation2 + $0xd0] sm:$0x3]  ;;  %v4442_v8 = vpack.c.bf16 %v405_v47, %v405_v47  ;;  %3661 = vmatpush3.bf16.msra.mxu1 %v3985_v5  ;;  %v4447_v13 = vld [vmem:[#allocation5 + $0x48] sm:$0xff]   ;;  %v410_v21 = vld [vmem:[#allocation2 + $0xe0] sm:$0xff] }
  0x78   : > { %3627 = vmatpush3.bf16.msra.mxu0 %v3984_v26  ;;  %v550_v0 = vrot.slane %v548_v44, 1  ;;  %v560_v9 = vshll.u32 %v4420_v55, 16  ;;  %v539_v11 = vor.u32 %v538_v60, %v534_v53  ;;  %v543_v12 = vrot.slane %v541_v54, 1  ;;  %v409_v19 = vld [vmem:[#allocation2 + $0xd8] sm:$0xff]  ;;  %3662 = vmatprep.subr.bf16.mxu1 %v3986_v6  ;;  %v412_v22 = vld [vmem:[#allocation2 + $0xf0] sm:$0xff]  ;;  %v347_v36 = vld [vmem:[%s4236_s29 + $0xf0] sm:$0xff] }
  0x79   : > { %v555_v16 = vrot.slane %v553_v1, 1  ;;  %v4451_v17 = vpack.c.bf16 %v408_v7, %v408_v7  ;;  %v572_v18 = vshll.u32 %v4438_v2, 16  ;;  %v413_v24 = vld [vmem:[#allocation2 + $0xf8] sm:$0xff]  ;;  %3696 = vmatprep.subr.bf16.mxu0 %v4447_v13  ;;  %v558_v25 = vshrl.u32 %v4420_v55, 16  ;;  %v411_v32 = vld [vmem:[#allocation2 + $0xe8] sm:$0x3] }
  0x7a   : > { %v551_v15 = vor.u32 %v550_v0, %v546_v61  ;;  %v562_v26 = vrot.slane %v560_v9, 1  ;;  %v565_v28 = vshll.u32 %v4442_v8, 16  ;;  %v4460_v30 = vsel %vm472_vm3, %v539_v11, %v543_v12  ;;  %v414_v39 = vld [vmem:[#allocation2 + $0x100] sm:$0x3]  ;;  %380 = vst.msk [vmem:[#allocation2 + $0x181] sm:$0xff] %vm261_vm0, %v347_v36  ;;  %v348_v42 = vld [vmem:[%s4236_s29 + $0xf8] sm:$0xff] }
  0x7b   : > { %3561 = vmatmul.mubr.msk.bf16.gmra.mxu0 %vm261_vm0, %v4428_v59  ;;  %v570_v31 = vshrl.u32 %v4438_v2, 16  ;;  %v4463_v34 = vpack.c.bf16 %v410_v21, %v409_v19  ;;  %3663 = vmatpush3.bf16.msra.mxu1 %v3986_v6  ;;  %v574_v38 = vrot.slane %v572_v18, 1  ;;  %v577_v10 = vshll.u32 %v4451_v17, 16  ;;  %v4474_v43 = vld [vmem:[#allocation5 + $0x58] sm:$0xff]   ;;  %381 = vst.msk [vmem:[#allocation2 + $0x189] sm:$0xff] %vm261_vm0, %v348_v42  ;;  %v416_v54 = vld [vmem:[#allocation2 + $0x110] sm:$0xff] }
  0x7c   : > { %3564 = vmatprep.mubr.msk.bf16.mxu0 %vm261_vm0, %v4435_v62  ;;  %v4467_v37 = vsel %vm472_vm3, %v551_v15, %v555_v16  ;;  %v4470_v41 = vpack.c.bf16 %v413_v24, %v412_v22  ;;  %v563_v44 = vor.u32 %v562_v26, %v558_v25  ;;  %v567_v47 = vrot.slane %v565_v28, 1  ;;  %v415_v49 = vld [vmem:[#allocation2 + $0x108] sm:$0xff]  ;;  %3732 = vmatprep.subr.bf16.mxu1 %v4474_v43  ;;  %v417_v61 = vld [vmem:[#allocation2 + $0x118] sm:$0x3]  ;;  %v418_v0 = vld [vmem:[#allocation2 + $0x120] sm:$0xff] }
  0x7d   : > { %3601 = vmatmul.mubr.msk.bf16.gmra.mxu1 %vm261_vm0, %v4382_v20  ;;  %v4478_v48 = vpack.c.bf16 %v411_v32, %v411_v32  ;;  %v584_v52 = vshll.u32 %v4463_v34, 16  ;;  %v4484_v53 = vpack.c.bf16 %v414_v39, %v414_v39  ;;  %v575_v56 = vor.u32 %v574_v38, %v570_v31  ;;  %v419_v1 = vld [vmem:[#allocation2 + $0x128] sm:$0xff]  ;;  %v420_v21 = vld [vmem:[#allocation2 + $0x130] sm:$0x3]  ;;  %v421_v31 = vld [vmem:[#allocation2 + $0x138] sm:$0xff] }
  0x7e   : > { %3604 = vmatprep.mubr.msk.bf16.mxu1 %vm261_vm0, %v4400_v35  ;;  %v579_v57 = vrot.slane %v577_v10, 1  ;;  %v596_v58 = vshll.u32 %v4470_v41, 16  ;;  %v730_v60 = vrot.slane %v4353_v46, 1  ;;  %v4494_v5 = vsel %vm472_vm3, %v563_v44, %v567_v47  ;;  %v422_v39 = vld [vmem:[#allocation2 + $0x140] sm:$0xff]  ;;  %v424_v42 = vld [vmem:[#allocation2 + $0x150] sm:$0xff]  ;;  %v425_v44 = vld [vmem:[#allocation2 + $0x158] sm:$0xff] }
  0x7f   : > { %v582_v6 = vshrl.u32 %v4463_v34, 16  ;;  %v589_v7 = vshll.u32 %v4478_v48, 16  ;;  %v586_v9 = vrot.slane %v584_v52, 1  ;;  %v594_v11 = vshrl.u32 %v4470_v41, 16 }
  0x80   : > { %v601_v12 = vshll.u32 %v4484_v53, 16  ;;  %v4500_v15 = vpack.c.bf16 %v416_v54, %v415_v49  ;;  %v4503_v46 = vsel %vm472_vm3, %v575_v56, %v579_v57  ;;  %v598_v16 = vrot.slane %v596_v58, 1 }
  0x81   : > { %v4505_v18 = vpack.c.bf16 %v419_v1, %v418_v0  ;;  %v729_v19 = vrot.slane %v4351_v45, 1  ;;  %v4510_v22 = vpack.c.bf16 %v417_v61, %v417_v61  ;;  %v587_v25 = vor.u32 %v586_v9, %v582_v6  ;;  %v423_v0 = vld [vmem:[#allocation2 + $0x148] sm:$0x3]  ;;  %v426_v6 = vld [vmem:[#allocation2 + $0x160] sm:$0x3] }
  0x82   : > { %v591_v26 = vrot.slane %v589_v7, 1  ;;  %v608_v28 = vshll.u32 %v4500_v15, 16  ;;  %v599_v32 = vor.u32 %v598_v16, %v594_v11  ;;  %v603_v36 = vrot.slane %v601_v12, 1 }
  0x83   : > { %3565 = vmatmul.mubr.msk.bf16.gmra.mxu0 %vm261_vm0, %v4460_v30  ;;  %v4513_v24 = vsel %vm725_vm2, %v729_v19, %v730_v60  ;;  %v4520_v38 = vpack.c.bf16 %v420_v21, %v420_v21  ;;  %v620_v10 = vshll.u32 %v4505_v18, 16  ;;  %v606_v47 = vshrl.u32 %v4500_v15, 16 }
  0x84   : > { %3568 = vmatprep.mubr.msk.bf16.mxu0 %vm261_vm0, %v4467_v37  ;;  %v613_v49 = vshll.u32 %v4510_v22, 16  ;;  %v4528_v52 = vsel %vm472_vm3, %v587_v25, %v591_v26  ;;  %v610_v54 = vrot.slane %v608_v28, 1  ;;  %v618_v56 = vshrl.u32 %v4505_v18, 16  ;;  %v427_v26 = vld [vmem:[#allocation2 + $0x168] sm:$0xff]  ;;  %v428_v28 = vld [vmem:[#allocation2 + $0x170] sm:$0xff] }
  0x85   : > { %3605 = vmatmul.mubr.msk.bf16.gmra.mxu1 %vm261_vm0, %v4420_v55  ;;  %v4531_v57 = vpack.c.bf16 %v422_v39, %v421_v31  ;;  %v4534_v58 = vsel %vm472_vm3, %v599_v32, %v603_v36  ;;  %v622_v60 = vrot.slane %v620_v10, 1  ;;  %v625_v61 = vshll.u32 %v4520_v38, 16 }
  0x86   : > { %3608 = vmatprep.mubr.msk.bf16.mxu1 %vm261_vm0, %v4438_v2  ;;  %v4537_v1 = vpack.c.bf16 %v425_v44, %v424_v42  ;;  %v611_v7 = vor.u32 %v610_v54, %v606_v47  ;;  %v615_v9 = vrot.slane %v613_v49, 1  ;;  %v4543_v11 = vpack.c.bf16 %v423_v0, %v423_v0  ;;  %v429_v54 = vld [vmem:[#allocation2 + $0x178] sm:$0x3] }
  0x87   : > { %v632_v12 = vshll.u32 %v4531_v57, 16  ;;  %v623_v16 = vor.u32 %v622_v60, %v618_v56  ;;  %v627_v19 = vrot.slane %v625_v61, 1  ;;  %v4548_v21 = vpack.c.bf16 %v426_v6, %v426_v6 }
  0x88   : > { %v644_v25 = vshll.u32 %v4537_v1, 16  ;;  %v630_v31 = vshrl.u32 %v4531_v57, 16  ;;  %v4555_v32 = vsel %vm472_vm3, %v611_v7, %v615_v9  ;;  %v637_v10 = vshll.u32 %v4543_v11, 16 }
  0x89   : > { %v634_v36 = vrot.slane %v632_v12, 1  ;;  %v4558_v39 = vpack.c.bf16 %v428_v28, %v427_v26  ;;  %v4561_v42 = vsel %vm472_vm3, %v623_v16, %v627_v19  ;;  %v642_v44 = vshrl.u32 %v4537_v1, 16 }
  0x8a   : > { %v646_v47 = vrot.slane %v644_v25, 1  ;;  %v649_v49 = vshll.u32 %v4548_v21, 16  ;;  %v639_v60 = vrot.slane %v637_v10, 1  ;;  %v4569_v61 = vpack.c.bf16 %v429_v54, %v429_v54 }
  0x8b   : > { %3569 = vmatmul.mubr.msk.bf16.gmra.mxu0 %vm261_vm0, %v4494_v5  ;;  %v635_v56 = vor.u32 %v634_v36, %v630_v31  ;;  %v656_v0 = vshll.u32 %v4558_v39, 16  ;;  %v654_v12 = vshrl.u32 %v4558_v39, 16  ;;  %v3990_v36 = vld [vmem:[#allocation5 + $0x50] sm:$0xff]   ;;  %v732_v10 = vrot.slane %v4355_v50, 1 }
  0x8c   : > { %3572 = vmatprep.mubr.msk.bf16.mxu0 %vm261_vm0, %v4503_v46  ;;  %v647_v6 = vor.u32 %v646_v47, %v642_v44  ;;  %v651_v7 = vrot.slane %v649_v49, 1  ;;  %v661_v19 = vshll.u32 %v4569_v61, 16  ;;  %v733_v44 = vrot.slane %v4357_v51, 1  ;;  %v3988_v49 = vld [vmem:[#allocation5 + $0x40] sm:$0xff]  }
  0x8d   : > { %3609 = vmatmul.mubr.msk.bf16.gmra.mxu1 %vm261_vm0, %v4463_v34  ;;  %v4577_v9 = vsel %vm472_vm3, %v635_v56, %v639_v60  ;;  %v658_v16 = vrot.slane %v656_v0, 1  ;;  %v736_v51 = vrot.slane %v4371_v3, 1  ;;  %v739_v54 = vrot.slane %v4378_v14, 1  ;;  %v4623_v56 = vld [vmem:[#allocation5 + $0x68] sm:$0xff]  }
  0x8e   : > { %3612 = vmatprep.mubr.msk.bf16.mxu1 %vm261_vm0, %v4470_v41  ;;  %v4582_v25 = vsel %vm472_vm3, %v647_v6, %v651_v7  ;;  %v663_v28 = vrot.slane %v661_v19, 1  ;;  %v4609_v47 = vsel %vm725_vm2, %v732_v10, %v733_v44  ;;  %v741_v3 = vrot.slane %v4382_v20, 1 }
  0x8f   : > { %v659_v26 = vor.u32 %v658_v16, %v654_v12  ;;  %v742_v14 = vrot.slane %v4393_v29, 1  ;;  %v744_v0 = vrot.slane %v4400_v35, 1  ;;  %v745_v6 = vrot.slane %v4405_v40, 1 }
  0x90   : > { %v747_v29 = vrot.slane %v4420_v55, 1  ;;  %v748_v16 = vrot.slane %v4442_v8, 1  ;;  %v750_v40 = vrot.slane %v4438_v2, 1  ;;  %v751_v19 = vrot.slane %v4451_v17, 1 }
  0x91   : > { %v4593_v31 = vsel %vm472_vm3, %v659_v26, %v663_v28  ;;  %v4647_v7 = vsel %vm725_vm2, %v741_v3, %v742_v14  ;;  %v4650_v12 = vsel %vm725_vm2, %v744_v0, %v745_v6  ;;  %v753_v8 = vrot.slane %v4463_v34, 1  ;;  %v430_v0 = vld [vmem:[#allocation2 + $0x180] sm:$0xff]  ;;  %v431_v6 = vld [vmem:[#allocation2 + $0x188] sm:$0xff] }
  0x92   : > { %v4665_v26 = vsel %vm725_vm2, %v747_v29, %v748_v16  ;;  %v4668_v28 = vsel %vm725_vm2, %v750_v40, %v751_v19  ;;  %v756_v17 = vrot.slane %v4470_v41, 1  ;;  %v757_v10 = vrot.slane %v4484_v53, 1 }
  0x93   : > { %3573 = vmatmul.mubr.msk.bf16.gmra.mxu0 %vm261_vm0, %v4528_v52  ;;  %v762_v53 = vrot.slane %v4505_v18, 1  ;;  %v766_v3 = vrot.slane %v4543_v11, 1  ;;  %v769_v14 = vrot.slane %v4548_v21, 1  ;;  %v4724_v40 = vpack.c.bf16 %v431_v6, %v430_v0  ;;  %v3996_v6 = vld [vmem:[#allocation5 + $0x80] sm:$0xff]  }
  0x94   : > { %3576 = vmatprep.mubr.msk.bf16.mxu0 %vm261_vm0, %v4534_v58  ;;  %v771_v11 = vrot.slane %v4558_v39, 1  ;;  %v772_v21 = vrot.slane %v4569_v61, 1  ;;  %v432_v61 = vld [vmem:[#allocation2 + $0x190] sm:$0x3] }
  0x95   : > { %3613 = vmatmul.mubr.msk.bf16.gmra.mxu1 %vm261_vm0, %v4500_v15 }
  0x96   : > { %3616 = vmatprep.mubr.msk.bf16.mxu1 %vm261_vm0, %v4505_v18  ;;  %v4737_v19 = vsel %vm725_vm2, %v771_v11, %v772_v21 }
  0x9b   : > { %3577 = vmatmul.mubr.msk.bf16.gmra.mxu0 %vm261_vm0, %v4555_v32 }
  0x9c   : > { %3580 = vmatprep.mubr.msk.bf16.mxu0 %vm261_vm0, %v4561_v42 }
  0x9d   : > { %3617 = vmatmul.mubr.msk.bf16.gmra.mxu1 %vm261_vm0, %v4531_v57 }
  0x9e   : > { %3620 = vmatprep.mubr.msk.bf16.mxu1 %vm261_vm0, %v4537_v1 }
  0xa3   : > { %3581 = vmatmul.mubr.msk.bf16.gmra.mxu0 %vm261_vm0, %v4577_v9 }
  0xa4   : > { %3584 = vmatprep.mubr.msk.bf16.mxu0 %vm261_vm0, %v4582_v25 }
  0xa5   : > { %3621 = vmatmul.mubr.msk.bf16.gmra.mxu1 %vm261_vm0, %v4558_v39 }
  0xa6   : > { %3664 = vmatprep.mubr.msk.bf16.mxu1 %vm261_vm0, %v4351_v45  ;;  %v4606_v45 = vld [vmem:[#allocation5 + $0x78] sm:$0xff]  }
  0xab   : > { %3585 = vmatmul.mubr.msk.bf16.gmra.mxu0 %vm261_vm0, %v4593_v31 }
  0xac   : > { %3628 = vmatprep.mubr.msk.bf16.mxu0 %vm261_vm0, %v4332_v33  ;;  %v735_v33 = vrot.slane %v4369_v63, 1 }
  0xad   : > { %3665 = vmatmul.mubr.msk.bf16.vlgmr.msra.gmra.mxu1 %vm261_vm0, %v4355_v50 }
  0xae   : > { %3668 = vmatprep.mubr.msk.bf16.mxu1 %vm261_vm0, %v4369_v63  ;;  %3733 = vmatpush3.bf16.msra.mxu1 %v4474_v43  ;;  %v738_v43 = vrot.slane %v4373_v4, 1 }
  0xaf   : > { %3734 = vmatprep.subr.bf16.mxu1 %v3990_v36 }
  0xb0   : > { %v4631_v60 = vsel %vm725_vm2, %v738_v43, %v739_v54 }
  0xb2   : > { %3735 = vmatpush3.bf16.msra.mxu1 %v3990_v36  ;;  %v754_v36 = vrot.slane %v4478_v48, 1  ;;  %v759_v48 = vrot.slane %v4500_v15, 1 }
  0xb3   : > { %3629 = vmatmul.mubr.msk.bf16.vlgmr.msra.gmra.mxu0 %vm261_vm0, %v4513_v24  ;;  %3804 = vmatprep.subr.bf16.mxu1 %v4606_v45 }
  0xb4   : > { %3697 = vmatpush3.bf16.msra.mxu0 %v4447_v13  ;;  %3632 = vmatprep.mubr.msk.bf16.mxu0 %vm261_vm0, %v4609_v47  ;;  %v4628_v13 = vsel %vm725_vm2, %v735_v33, %v736_v51  ;;  %v4683_v44 = vsel %vm725_vm2, %v753_v8, %v754_v36  ;;  %v760_v33 = vrot.slane %v4510_v22, 1  ;;  %v763_v51 = vrot.slane %v4520_v38, 1  ;;  %v3994_v8 = vld [vmem:[#allocation5 + $0x70] sm:$0xff]  }
  0xb5   : > { %3669 = vmatmul.mubr.msk.bf16.gmra.mxu1 %vm261_vm0, %v4373_v4  ;;  %3698 = vmatprep.subr.bf16.mxu0 %v3988_v49  ;;  %v765_v22 = vrot.slane %v4531_v57, 1  ;;  %v768_v38 = vrot.slane %v4537_v1, 1  ;;  %v774_v36 = vrot.slane %v4724_v40, 1 }
  0xb6   : > { %3672 = vmatprep.mubr.msk.bf16.mxu1 %vm261_vm0, %v4382_v20  ;;  %v4701_v43 = vsel %vm725_vm2, %v759_v48, %v760_v33  ;;  %v4704_v54 = vsel %vm725_vm2, %v762_v53, %v763_v51 }
  0xb7   : > { %v4719_v29 = vsel %vm725_vm2, %v765_v22, %v766_v3  ;;  %v4722_v16 = vsel %vm725_vm2, %v768_v38, %v769_v14 }
  0xb8   : > { %3699 = vmatpush3.bf16.msra.mxu0 %v3988_v49  ;;  %v4686_v49 = vsel %vm725_vm2, %v756_v17, %v757_v10  ;;  %v666_v10 = vshrl.u32 %v4724_v40, 16 }
  0xb9   : > { %3768 = vmatprep.subr.bf16.mxu0 %v4623_v56 }
  0xbb   : > { %3633 = vmatmul.mubr.msk.bf16.gmra.mxu0 %vm261_vm0, %v4628_v13 }
  0xbc   : > { %3636 = vmatprep.mubr.msk.bf16.mxu0 %vm261_vm0, %v4631_v60 }
  0xbd   : > { %3673 = vmatmul.mubr.msk.bf16.gmra.mxu1 %vm261_vm0, %v4400_v35 }
  0xbe   : > { %3676 = vmatprep.mubr.msk.bf16.mxu1 %vm261_vm0, %v4420_v55 }
  0xc3   : > { %3637 = vmatmul.mubr.msk.bf16.gmra.mxu0 %vm261_vm0, %v4647_v7 }
  0xc4   : > { %3640 = vmatprep.mubr.msk.bf16.mxu0 %vm261_vm0, %v4650_v12 }
  0xc5   : > { %3677 = vmatmul.mubr.msk.bf16.gmra.mxu1 %vm261_vm0, %v4438_v2 }
  0xc6   : > { %3680 = vmatprep.mubr.msk.bf16.mxu1 %vm261_vm0, %v4463_v34 }
  0xcb   : > { %3641 = vmatmul.mubr.msk.bf16.gmra.mxu0 %vm261_vm0, %v4665_v26 }
  0xcc   : > { %3644 = vmatprep.mubr.msk.bf16.mxu0 %vm261_vm0, %v4668_v28 }
  0xcd   : > { %3681 = vmatmul.mubr.msk.bf16.gmra.mxu1 %vm261_vm0, %v4470_v41 }
  0xce   : > { %3684 = vmatprep.mubr.msk.bf16.mxu1 %vm261_vm0, %v4500_v15 }
  0xd3   : > { %3645 = vmatmul.mubr.msk.bf16.gmra.mxu0 %vm261_vm0, %v4683_v44 }
  0xd4   : > { %3648 = vmatprep.mubr.msk.bf16.mxu0 %vm261_vm0, %v4686_v49 }
  0xd5   : > { %3685 = vmatmul.mubr.msk.bf16.gmra.mxu1 %vm261_vm0, %v4505_v18 }
  0xd6   : > { %3688 = vmatprep.mubr.msk.bf16.mxu1 %vm261_vm0, %v4531_v57 }
  0xdb   : > { %3649 = vmatmul.mubr.msk.bf16.gmra.mxu0 %vm261_vm0, %v4701_v43 }
  0xdc   : > { %3652 = vmatprep.mubr.msk.bf16.mxu0 %vm261_vm0, %v4704_v54 }
  0xdd   : > { %3689 = vmatmul.mubr.msk.bf16.gmra.mxu1 %vm261_vm0, %v4537_v1 }
  0xde   : > { %3692 = vmatprep.mubr.msk.bf16.mxu1 %vm261_vm0, %v4558_v39 }
  0xe3   : > { %3653 = vmatmul.mubr.msk.bf16.gmra.mxu0 %vm261_vm0, %v4719_v29 }
  0xe4   : > { %3656 = vmatprep.mubr.msk.bf16.mxu0 %vm261_vm0, %v4722_v16 }
  0xe5   : > { %3693 = vmatmul.mubr.msk.bf16.gmra.mxu1 %vm261_vm0, %v4724_v40 }
  0xe6   : > { %3736 = vmatprep.mubr.msk.bf16.mxu1 %vm261_vm0, %v4513_v24  ;;  %v3992_v24 = vld [vmem:[#allocation5 + $0x60] sm:$0xff]  }
  0xeb   : > { %3657 = vmatmul.mubr.msk.bf16.gmra.mxu0 %vm261_vm0, %v4737_v19 }
  0xec   : > { %3700 = vmatprep.mubr.msk.bf16.mxu0 %vm261_vm0, %v4385_v23  ;;  %v3995_v23 = vld [vmem:[#allocation5 + $0x88] sm:$0xff]  }
  0xed   : > { %3737 = vmatmul.mubr.msk.bf16.vlgmr.msra.gmra.mxu1 %vm261_vm0, %v4609_v47 }
  0xee   : > { %3740 = vmatprep.mubr.msk.bf16.mxu1 %vm261_vm0, %v4628_v13  ;;  %3805 = vmatpush3.bf16.msra.mxu1 %v4606_v45  ;;  %v469_v45 = vpack.c.bf16 %v432_v61, %v432_v61 }
  0xef   : > { %3806 = vmatprep.subr.bf16.mxu1 %v3994_v8 }
  0xf0   : > { %v775_v17 = vrot.slane %v469_v45, 1  ;;  %v673_v33 = vshll.u32 %v469_v45, 16 }
  0xf2   : > { %3807 = vmatpush3.bf16.msra.mxu1 %v3994_v8  ;;  %v4801_v53 = vsel %vm725_vm2, %v774_v36, %v775_v17  ;;  %v675_v22 = vrot.slane %v673_v33, 1 }
  0xf3   : > { %3701 = vmatmul.mubr.msk.bf16.vlgmr.msra.gmra.mxu0 %vm261_vm0, %v4391_v27 }
  0xf4   : > { %3769 = vmatpush3.bf16.msra.mxu0 %v4623_v56  ;;  %3704 = vmatprep.mubr.msk.bf16.mxu0 %vm261_vm0, %v4428_v59  ;;  %v668_v56 = vshll.u32 %v4724_v40, 16 }
  0xf5   : > { %3741 = vmatmul.mubr.msk.bf16.gmra.mxu1 %vm261_vm0, %v4631_v60  ;;  %3770 = vmatprep.subr.bf16.mxu0 %v3992_v24 }
  0xf6   : > { %3744 = vmatprep.mubr.msk.bf16.mxu1 %vm261_vm0, %v4647_v7  ;;  %v670_v48 = vrot.slane %v668_v56, 1 }
  0xf8   : > { %3771 = vmatpush3.bf16.msra.mxu0 %v3992_v24  ;;  %v671_v51 = vor.u32 %v670_v48, %v666_v10 }
  0xf9   : > { %3840 = vmatprep.subr.bf16.mxu0 %v3995_v23 }
  0xfa   : > { %v4812_v3 = vsel %vm472_vm3, %v671_v51, %v675_v22 }
  0xfb   : > { %3705 = vmatmul.mubr.msk.bf16.gmra.mxu0 %vm261_vm0, %v4435_v62 }
  0xfc   : > { %3708 = vmatprep.mubr.msk.bf16.mxu0 %vm261_vm0, %v4460_v30 }
  0xfd   : > { %3745 = vmatmul.mubr.msk.bf16.gmra.mxu1 %vm261_vm0, %v4650_v12 }
  0xfe   : > { %3748 = vmatprep.mubr.msk.bf16.mxu1 %vm261_vm0, %v4665_v26 }
 0x103   : > { %3709 = vmatmul.mubr.msk.bf16.gmra.mxu0 %vm261_vm0, %v4467_v37 }
 0x104   : > { %3712 = vmatprep.mubr.msk.bf16.mxu0 %vm261_vm0, %v4494_v5 }
 0x105   : > { %3749 = vmatmul.mubr.msk.bf16.gmra.mxu1 %vm261_vm0, %v4668_v28 }
 0x106   : > { %3752 = vmatprep.mubr.msk.bf16.mxu1 %vm261_vm0, %v4683_v44 }
 0x10b   : > { %3713 = vmatmul.mubr.msk.bf16.gmra.mxu0 %vm261_vm0, %v4503_v46 }
 0x10c   : > { %3716 = vmatprep.mubr.msk.bf16.mxu0 %vm261_vm0, %v4528_v52 }
 0x10d   : > { %3753 = vmatmul.mubr.msk.bf16.gmra.mxu1 %vm261_vm0, %v4686_v49 }
 0x10e   : > { %3756 = vmatprep.mubr.msk.bf16.mxu1 %vm261_vm0, %v4701_v43 }
 0x113   : > { %3717 = vmatmul.mubr.msk.bf16.gmra.mxu0 %vm261_vm0, %v4534_v58 }
 0x114   : > { %3720 = vmatprep.mubr.msk.bf16.mxu0 %vm261_vm0, %v4555_v32 }
 0x115   : > { %3757 = vmatmul.mubr.msk.bf16.gmra.mxu1 %vm261_vm0, %v4704_v54 }
 0x116   : > { %3760 = vmatprep.mubr.msk.bf16.mxu1 %vm261_vm0, %v4719_v29 }
 0x11b   : > { %3721 = vmatmul.mubr.msk.bf16.gmra.mxu0 %vm261_vm0, %v4561_v42 }
 0x11c   : > { %3724 = vmatprep.mubr.msk.bf16.mxu0 %vm261_vm0, %v4577_v9 }
 0x11d   : > { %3761 = vmatmul.mubr.msk.bf16.gmra.mxu1 %vm261_vm0, %v4722_v16 }
 0x11e   : > { %3764 = vmatprep.mubr.msk.bf16.mxu1 %vm261_vm0, %v4737_v19 }
 0x123   : > { %3725 = vmatmul.mubr.msk.bf16.gmra.mxu0 %vm261_vm0, %v4582_v25 }
 0x124   : > { %3728 = vmatprep.mubr.msk.bf16.mxu0 %vm261_vm0, %v4593_v31 }
 0x125   : > { %3765 = vmatmul.mubr.msk.bf16.gmra.mxu1 %vm261_vm0, %v4801_v53 }
 0x126   : > { %3808 = vmatprep.mubr.msk.bf16.mxu1 %vm261_vm0, %v4391_v27 }
 0x12b   : > { %3729 = vmatmul.mubr.msk.bf16.gmra.mxu0 %vm261_vm0, %v4812_v3 }
 0x12c   : > { %3772 = vmatprep.mubr.msk.bf16.mxu0 %vm261_vm0, %v4355_v50  ;;  %v3594_v38 = vpop.f32.mrf.mxu1 }
 0x12d   : > { %3809 = vmatmul.mubr.msk.bf16.vlgmr.msra.gmra.mxu1 %vm261_vm0, %v4428_v59 }
 0x12e   : > { %v1088_v14 = vpop.f32.mrf.mxu1  ;;  %3812 = vmatprep.mubr.msk.bf16.mxu1 %vm261_vm0, %v4435_v62 }
 0x130   : > { %v3595_v0 = vpop.f32.mrf.mxu1 }
 0x132   : > { %v1091_v27 = vpop.f32.mrf.mxu1 }
 0x133   : > { %v3558_v11 = vpop.f32.mrf.mxu0  ;;  %3773 = vmatmul.mubr.msk.bf16.vlgmr.msra.gmra.mxu0 %vm261_vm0, %v4369_v63 }
 0x134   : > { %v4824_v21 = vadd.f32 %v3594_v38, %v3558_v11  ;;  %3841 = vmatpush3.bf16.msra.mxu0 %v3995_v23  ;;  %3776 = vmatprep.mubr.msk.bf16.mxu0 %vm261_vm0, %v4373_v4 }
 0x135   : > { %v883_v50 = vpop.f32.mrf.mxu0  ;;  %v3598_v8 = vpop.f32.mrf.mxu1  ;;  %3813 = vmatmul.mubr.msk.bf16.gmra.mxu1 %vm261_vm0, %v4460_v30  ;;  %3842 = vmatprep.subr.bf16.mxu0 %v3996_v6 }
 0x136   : > { %v4830_v59 = vadd.f32 %v1088_v14, %v883_v50  ;;  %3816 = vmatprep.mubr.msk.bf16.mxu1 %vm261_vm0, %v4467_v37 }
 0x137   : > { %v3559_v62 = vpop.f32.mrf.mxu0  ;;  %v1104_v24 = vpop.f32.mrf.mxu1 }
 0x138   : > { %v4834_v63 = vadd.f32 %v3595_v0, %v3559_v62  ;;  %3843 = vmatpush3.bf16.msra.mxu0 %v3996_v6 }
 0x139   : > { %v886_v23 = vpop.f32.mrf.mxu0  ;;  %v3599_v61 = vpop.f32.mrf.mxu1 }
 0x13a   : > { %v4836_v45 = vadd.f32 %v1091_v27, %v886_v23 }
 0x13b   : > { %v3562_v4 = vpop.f32.mrf.mxu0  ;;  %3777 = vmatmul.mubr.msk.bf16.gmra.mxu0 %vm261_vm0, %v4382_v20  ;;  %v1107_v30 = vpop.f32.mrf.mxu1 }
 0x13c   : > { %v4840_v56 = vadd.f32 %v3598_v8, %v3562_v4  ;;  %3780 = vmatprep.mubr.msk.bf16.mxu0 %vm261_vm0, %v4400_v35 }
 0x13d   : > { %v899_v37 = vpop.f32.mrf.mxu0  ;;  %v3602_v36 = vpop.f32.mrf.mxu1  ;;  %3817 = vmatmul.mubr.msk.bf16.gmra.mxu1 %vm261_vm0, %v4494_v5 }
 0x13e   : > { %v4846_v17 = vadd.f32 %v1104_v24, %v899_v37  ;;  %3820 = vmatprep.mubr.msk.bf16.mxu1 %vm261_vm0, %v4503_v46 }
 0x13f   : > { %v3563_v10 = vpop.f32.mrf.mxu0  ;;  %v1120_v48 = vpop.f32.mrf.mxu1 }
 0x140   : > { %v4850_v33 = vadd.f32 %v3599_v61, %v3563_v10 }
 0x141   : > { %v902_v20 = vpop.f32.mrf.mxu0  ;;  %v3603_v51 = vpop.f32.mrf.mxu1 }
 0x142   : > { %v4852_v22 = vadd.f32 %v1107_v30, %v902_v20  ;;  %v433_v30 = vld [vmem:[#allocation2 + $0x198] sm:$0xff] }
 0x143   : > { %v3566_v38 = vpop.f32.mrf.mxu0  ;;  %3781 = vmatmul.mubr.msk.bf16.gmra.mxu0 %vm261_vm0, %v4420_v55  ;;  %v1123_v35 = vpop.f32.mrf.mxu1 }
 0x144   : > { %v4856_v14 = vadd.f32 %v3602_v36, %v3566_v38  ;;  %3784 = vmatprep.mubr.msk.bf16.mxu0 %vm261_vm0, %v4438_v2 }
 0x145   : > { %v915_v5 = vpop.f32.mrf.mxu0  ;;  %v3606_v46 = vpop.f32.mrf.mxu1  ;;  %3821 = vmatmul.mubr.msk.bf16.gmra.mxu1 %vm261_vm0, %v4528_v52 }
 0x146   : > { %v4862_v0 = vadd.f32 %v1120_v48, %v915_v5  ;;  %3824 = vmatprep.mubr.msk.bf16.mxu1 %vm261_vm0, %v4534_v58 }
 0x147   : > { %v3567_v6 = vpop.f32.mrf.mxu0  ;;  %v1136_v27 = vpop.f32.mrf.mxu1 }
 0x148   : > { %v4866_v11 = vadd.f32 %v3603_v51, %v3567_v6  ;;  %v435_v51 = vld [vmem:[#allocation2 + $0x1a8] sm:$0x3] }
 0x149   : > { %v918_v55 = vpop.f32.mrf.mxu0  ;;  %v3607_v50 = vpop.f32.mrf.mxu1 }
 0x14a   : > { %v4868_v8 = vadd.f32 %v1123_v35, %v918_v55 }
 0x14b   : > { %v3570_v62 = vpop.f32.mrf.mxu0  ;;  %3785 = vmatmul.mubr.msk.bf16.gmra.mxu0 %vm261_vm0, %v4463_v34  ;;  %v1139_v2 = vpop.f32.mrf.mxu1  ;;  %v434_v34 = vld [vmem:[#allocation2 + $0x1a0] sm:$0xff] }
 0x14c   : > { %v4872_v24 = vadd.f32 %v3606_v46, %v3570_v62  ;;  %3788 = vmatprep.mubr.msk.bf16.mxu0 %vm261_vm0, %v4470_v41  ;;  %v4886_v41 = vpack.c.bf16 %v434_v34, %v433_v30  ;;  %v4902_v46 = vpack.c.bf16 %v435_v51, %v435_v51 }
 0x14d   : > { %v931_v52 = vpop.f32.mrf.mxu0  ;;  %v3610_v58 = vpop.f32.mrf.mxu1  ;;  %3825 = vmatmul.mubr.msk.bf16.gmra.mxu1 %vm261_vm0, %v4555_v32 }
 0x14e   : > { %v4878_v23 = vadd.f32 %v1136_v27, %v931_v52  ;;  %3828 = vmatprep.mubr.msk.bf16.mxu1 %vm261_vm0, %v4561_v42  ;;  %v678_v62 = vshrl.u32 %v4886_v41, 16 }
 0x14f   : > { %v3571_v61 = vpop.f32.mrf.mxu0  ;;  %v1152_v4 = vpop.f32.mrf.mxu1 }
 0x150   : > { %v4882_v37 = vadd.f32 %v3607_v50, %v3571_v61 }
 0x151   : > { %v934_v36 = vpop.f32.mrf.mxu0  ;;  %v3611_v10 = vpop.f32.mrf.mxu1 }
 0x152   : > { %v4884_v48 = vadd.f32 %v1139_v2, %v934_v36 }
 0x153   : > { %v3574_v20 = vpop.f32.mrf.mxu0  ;;  %3789 = vmatmul.mubr.msk.bf16.gmra.mxu0 %vm261_vm0, %v4500_v15  ;;  %v4890_v32 = vpop.f32.mrf.mxu1  ;;  %v680_v15 = vshll.u32 %v4886_v41, 16 }
 0x154   : > { %v4892_v42 = vadd.f32 %v3610_v58, %v3574_v20  ;;  %3792 = vmatprep.mubr.msk.bf16.mxu0 %vm261_vm0, %v4505_v18 }
 0x155   : > { %v947_v38 = vpop.f32.mrf.mxu0  ;;  %v3614_v35 = vpop.f32.mrf.mxu1  ;;  %3829 = vmatmul.mubr.msk.bf16.gmra.mxu1 %vm261_vm0, %v4577_v9  ;;  %v682_v2 = vrot.slane %v680_v15, 1  ;;  %v685_v9 = vshll.u32 %v4902_v46, 16 }
 0x156   : > { %v4898_v5 = vadd.f32 %v1152_v4, %v947_v38  ;;  %3832 = vmatprep.mubr.msk.bf16.mxu1 %vm261_vm0, %v4582_v25 }
 0x157   : > { %v3575_v6 = vpop.f32.mrf.mxu0  ;;  %v1168_v27 = vpop.f32.mrf.mxu1  ;;  %v683_v34 = vor.u32 %v682_v2, %v678_v62  ;;  %v687_v36 = vrot.slane %v685_v9, 1 }
 0x158   : > { %v4905_v55 = vadd.f32 %v3611_v10, %v3575_v6 }
 0x159   : > { %v4907_v50 = vpop.f32.mrf.mxu0  ;;  %v3615_v18 = vpop.f32.mrf.mxu1 }
 0x15b   : > { %v3578_v52 = vpop.f32.mrf.mxu0  ;;  %3793 = vmatmul.mubr.msk.bf16.gmra.mxu0 %vm261_vm0, %v4531_v57  ;;  %v4913_v25 = vpop.f32.mrf.mxu1 }
 0x15c   : > { %v4915_v58 = vadd.f32 %v3614_v35, %v3578_v52  ;;  %3796 = vmatprep.mubr.msk.bf16.mxu0 %vm261_vm0, %v4537_v1  ;;  %v688_v1 = vsel %vm472_vm3, %v683_v34, %v687_v36 }
 0x15d   : > { %v963_v61 = vpop.f32.mrf.mxu0  ;;  %v3618_v4 = vpop.f32.mrf.mxu1  ;;  %3833 = vmatmul.mubr.msk.bf16.gmra.mxu1 %vm261_vm0, %v4593_v31 }
 0x15e   : > { %v4921_v30 = vadd.f32 %v1168_v27, %v963_v61  ;;  %3836 = vmatprep.mubr.msk.bf16.mxu1 %vm261_vm0, %v4812_v3 }
 0x15f   : > { %v3579_v57 = vpop.f32.mrf.mxu0  ;;  %v1184_v10 = vpop.f32.mrf.mxu1 }
 0x160   : > { %v4925_v20 = vadd.f32 %v3615_v18, %v3579_v57 }
 0x161   : > { %v4927_v51 = vpop.f32.mrf.mxu0  ;;  %v3619_v38 = vpop.f32.mrf.mxu1 }
 0x163   : > { %v3582_v35 = vpop.f32.mrf.mxu0  ;;  %3797 = vmatmul.mubr.msk.bf16.gmra.mxu0 %vm261_vm0, %v4558_v39  ;;  %v4932_v31 = vpop.f32.mrf.mxu1 }
 0x164   : > { %v4934_v15 = vadd.f32 %v3618_v4, %v3582_v35  ;;  %3800 = vmatprep.mubr.msk.bf16.mxu0 %vm261_vm0, %v4724_v40 }
 0x165   : > { %v979_v3 = vpop.f32.mrf.mxu0  ;;  %v3622_v6 = vpop.f32.mrf.mxu1  ;;  %3837 = vmatmul.mubr.msk.bf16.gmra.mxu1 %vm261_vm0, %v688_v1 }
 0x166   : > { %v4939_v27 = vadd.f32 %v1184_v10, %v979_v3 }
 0x167   : > { %v3583_v18 = vpop.f32.mrf.mxu0  ;;  %v1200_v62 = vpop.f32.mrf.mxu1 }
 0x168   : > { %v4941_v2 = vadd.f32 %v3619_v38, %v3583_v18 }
 0x169   : > { %v4943_v9 = vpop.f32.mrf.mxu0  ;;  %v3623_v39 = vpop.f32.mrf.mxu1 }
 0x16b   : > { %v3586_v52 = vpop.f32.mrf.mxu0  ;;  %3801 = vmatmul.mubr.msk.bf16.gmra.mxu0 %vm261_vm0, %v4886_v41  ;;  %v4947_v61 = vpop.f32.mrf.mxu1 }
 0x16c   : > { %5643 = vst [vmem:[#allocation9_spill] sm:$0xff] %v4947_v61  ;;  %v4949_v40 = vadd.f32 %v3622_v6, %v3586_v52  ;;  %3844 = vmatprep.mubr.msk.bf16.mxu0 %vm261_vm0, %v4609_v47 }
 0x16d   : > { %v995_v4 = vpop.f32.mrf.mxu0  ;;  %v3666_v34 = vpop.f32.mrf.mxu1 }
 0x16e   : > { %v4953_v36 = vadd.f32 %v1200_v62, %v995_v4 }
 0x16f   : > { %v3587_v57 = vpop.f32.mrf.mxu0  ;;  %v1526_v10 = vpop.f32.mrf.mxu1 }
 0x170   : > { %v4955_v38 = vadd.f32 %v3623_v39, %v3587_v57 }
 0x171   : > { %v4957_v1 = vpop.f32.mrf.mxu0  ;;  %v3667_v35 = vpop.f32.mrf.mxu1 }
 0x172   : > { %5644 = vst [vmem:[#allocation10_spill] sm:$0xff] %v4955_v38  ;;  %5645 = vst [vmem:[#allocation11_spill] sm:$0xff] %v4957_v1 }
 0x173   : > { %v3630_v3 = vpop.f32.mrf.mxu0  ;;  %3845 = vmatmul.mubr.msk.bf16.vlgmr.msra.gmra.mxu0 %vm261_vm0, %v4628_v13  ;;  %v4961_v6 = vpop.f32.mrf.mxu1 }
 0x174   : > { %5646 = vst [vmem:[#allocation12_spill] sm:$0xff] %v4961_v6  ;;  %v1443_v18 = vadd.f32 %v3630_v3, %v4824_v21  ;;  %3848 = vmatprep.mubr.msk.bf16.mxu0 %vm261_vm0, %v4631_v60 }
 0x175   : > { %v1314_v47 = vpop.f32.mrf.mxu0  ;;  %v3670_v62 = vpop.f32.mrf.mxu1 }
 0x176   : > { %v1441_v52 = vadd.f32 %v1314_v47, %v4830_v59  ;;  %v4967_v39 = vadd.f32 %v3666_v34, %v1443_v18 }
 0x177   : > { %v3631_v4 = vpop.f32.mrf.mxu0  ;;  %v1542_v57 = vpop.f32.mrf.mxu1 }
 0x178   : > { %v1444_v38 = vadd.f32 %v3631_v4, %v4834_v63  ;;  %v4970_v61 = vadd.f32 %v1526_v10, %v1441_v52 }
 0x179   : > { %v1317_v13 = vpop.f32.mrf.mxu0  ;;  %v3671_v1 = vpop.f32.mrf.mxu1 }
 0x17a   : > { %v4973_v6 = vadd.f32 %v1317_v13, %v4836_v45  ;;  %v4975_v21 = vadd.f32 %v3667_v35, %v1444_v38 }
 0x17b   : > { %v3634_v60 = vpop.f32.mrf.mxu0  ;;  %3849 = vmatmul.mubr.msk.bf16.gmra.mxu0 %vm261_vm0, %v4647_v7  ;;  %v4979_v59 = vpop.f32.mrf.mxu1 }
 0x17c   : > { %v1447_v34 = vadd.f32 %v3634_v60, %v4840_v56  ;;  %3852 = vmatprep.mubr.msk.bf16.mxu0 %vm261_vm0, %v4650_v12  ;;  %v3997_v12 = vld [vmem:[%s5629_s3 + $0x38] sm:$0xff]  }
 0x17d   : > { %v1330_v63 = vpop.f32.mrf.mxu0  ;;  %v3674_v10 = vpop.f32.mrf.mxu1  ;;  %3876 = vmatprep.subr.bf16.mxu1 %v3997_v12 }
 0x17e   : > { %v1445_v3 = vadd.f32 %v1330_v63, %v4846_v17  ;;  %v4985_v18 = vadd.f32 %v3670_v62, %v1447_v34  ;;  %3877 = vmatpush3.bf16.msra.mxu1 %v3997_v12 }
 0x17f   : > { %v3635_v45 = vpop.f32.mrf.mxu0  ;;  %v1558_v38 = vpop.f32.mrf.mxu1 }
 0x180   : > { %v1448_v35 = vadd.f32 %v3635_v45, %v4850_v33  ;;  %v4988_v47 = vadd.f32 %v1542_v57, %v1445_v3 }
 0x181   : > { %v1333_v7 = vpop.f32.mrf.mxu0  ;;  %v3675_v52 = vpop.f32.mrf.mxu1 }
 0x182   : > { %v4991_v4 = vadd.f32 %v1333_v7, %v4852_v22  ;;  %v4993_v56 = vadd.f32 %v3671_v1, %v1448_v35  ;;  %v3998_v35 = vld [vmem:[%s5629_s3 + $0x30] sm:$0xff]  }
 0x183   : > { %v3638_v17 = vpop.f32.mrf.mxu0  ;;  %3853 = vmatmul.mubr.msk.bf16.gmra.mxu0 %vm261_vm0, %v4665_v26  ;;  %v5000_v62 = vpop.f32.mrf.mxu1  ;;  %3878 = vmatprep.subr.bf16.mxu1 %v3998_v35 }
 0x184   : > { %v1451_v33 = vadd.f32 %v3638_v17, %v4856_v14  ;;  %3856 = vmatprep.mubr.msk.bf16.mxu0 %vm261_vm0, %v4668_v28  ;;  %3879 = vmatpush3.bf16.msra.mxu1 %v3998_v35 }
 0x185   : > { %v1346_v22 = vpop.f32.mrf.mxu0  ;;  %v3678_v57 = vpop.f32.mrf.mxu1 }
 0x186   : > { %v1449_v1 = vadd.f32 %v1346_v22, %v4862_v0  ;;  %v5006_v13 = vadd.f32 %v3674_v10, %v1451_v33 }
 0x187   : > { %v3639_v60 = vpop.f32.mrf.mxu0  ;;  %v1574_v34 = vpop.f32.mrf.mxu1 }
 0x188   : > { %v1452_v63 = vadd.f32 %v3639_v60, %v4866_v11  ;;  %v5009_v26 = vadd.f32 %v1558_v38, %v1449_v1  ;;  %v3999_v60 = vld [vmem:[%s5629_s3 + $0x28] sm:$0xff]  }
 0x189   : > { %v1349_v3 = vpop.f32.mrf.mxu0  ;;  %v3679_v45 = vpop.f32.mrf.mxu1  ;;  %3880 = vmatprep.subr.bf16.mxu1 %v3999_v60 }
 0x18a   : > { %v5012_v14 = vadd.f32 %v1349_v3, %v4868_v8  ;;  %v5014_v28 = vadd.f32 %v3675_v52, %v1452_v63  ;;  %3881 = vmatpush3.bf16.msra.mxu1 %v3999_v60 }
 0x18b   : > { %v3642_v0 = vpop.f32.mrf.mxu0  ;;  %3857 = vmatmul.mubr.msk.bf16.gmra.mxu0 %vm261_vm0, %v4683_v44  ;;  %v5021_v10 = vpop.f32.mrf.mxu1 }
 0x18c   : > { %v1455_v11 = vadd.f32 %v3642_v0, %v4872_v24  ;;  %3860 = vmatprep.mubr.msk.bf16.mxu0 %vm261_vm0, %v4686_v49  ;;  %v1156_v0 = vadd.f32 %v4890_v32, %v4907_v50 }
 0x18d   : > { %v1362_v8 = vpop.f32.mrf.mxu0  ;;  %v3682_v38 = vpop.f32.mrf.mxu1 }
 0x18e   : > { %v1453_v7 = vadd.f32 %v1362_v8, %v4878_v23  ;;  %v5027_v52 = vadd.f32 %v3678_v57, %v1455_v11 }
 0x18f   : > { %v3643_v12 = vpop.f32.mrf.mxu0  ;;  %v1590_v17 = vpop.f32.mrf.mxu1 }
 0x190   : > { %v1456_v33 = vadd.f32 %v3643_v12, %v4882_v37  ;;  %v5030_v44 = vadd.f32 %v1574_v34, %v1453_v7 }
 0x191   : > { %v1365_v22 = vpop.f32.mrf.mxu0  ;;  %v3683_v1 = vpop.f32.mrf.mxu1 }
 0x192   : > { %v5033_v24 = vadd.f32 %v1365_v22, %v4884_v48  ;;  %v5035_v49 = vadd.f32 %v3679_v45, %v1456_v33 }
 0x193   : > { %v3646_v23 = vpop.f32.mrf.mxu0  ;;  %3861 = vmatmul.mubr.msk.bf16.gmra.mxu0 %vm261_vm0, %v4701_v43  ;;  %v1593_v57 = vpop.f32.mrf.mxu1 }
 0x194   : > { %v1459_v37 = vadd.f32 %v3646_v23, %v4892_v42  ;;  %3864 = vmatprep.mubr.msk.bf16.mxu0 %vm261_vm0, %v4704_v54 }
 0x195   : > { %v1378_v34 = vpop.f32.mrf.mxu0  ;;  %v3686_v48 = vpop.f32.mrf.mxu1 }
 0x196   : > { %v1457_v63 = vadd.f32 %v1378_v34, %v4898_v5  ;;  %v5046_v3 = vadd.f32 %v3682_v38, %v1459_v37  ;;  %v4000_v5 = vld [vmem:[%s5629_s3 + $0x20] sm:$0xff]  }
 0x197   : > { %v3647_v45 = vpop.f32.mrf.mxu0  ;;  %v1606_v35 = vpop.f32.mrf.mxu1  ;;  %3882 = vmatprep.subr.bf16.mxu1 %v4000_v5 }
 0x198   : > { %v1460_v43 = vadd.f32 %v3647_v45, %v4905_v55  ;;  %v5051_v11 = vadd.f32 %v1590_v17, %v1457_v63  ;;  %3883 = vmatpush3.bf16.msra.mxu1 %v4000_v5  ;;  %v778_v45 = vrot.slane %v4902_v46, 1 }
 0x199   : > { %v1381_v42 = vpop.f32.mrf.mxu0  ;;  %v3687_v8 = vpop.f32.mrf.mxu1 }
 0x19a   : > { %v1458_v54 = vadd.f32 %v1381_v42, %v1156_v0  ;;  %v5053_v7 = vadd.f32 %v3683_v1, %v1460_v43 }
 0x19b   : > { %v3650_v38 = vpop.f32.mrf.mxu0  ;;  %3865 = vmatmul.mubr.msk.bf16.gmra.mxu0 %vm261_vm0, %v4719_v29  ;;  %v1609_v12 = vpop.f32.mrf.mxu1  ;;  %v1172_v29 = vadd.f32 %v4913_v25, %v4927_v51 }
 0x19c   : > { %v1463_v32 = vadd.f32 %v3650_v38, %v4915_v58  ;;  %v5061_v50 = vadd.f32 %v1593_v57, %v1458_v54  ;;  %3868 = vmatprep.mubr.msk.bf16.mxu0 %vm261_vm0, %v4722_v16 }
 0x19d   : > { %v1394_v55 = vpop.f32.mrf.mxu0  ;;  %v3690_v17 = vpop.f32.mrf.mxu1 }
 0x19e   : > { %v1461_v33 = vadd.f32 %v1394_v55, %v4921_v30  ;;  %v5066_v22 = vadd.f32 %v3686_v48, %v1463_v32  ;;  %v4001_v30 = vld [vmem:[%s5629_s3 + $0x18] sm:$0xff]  }
 0x19f   : > { %v3651_v1 = vpop.f32.mrf.mxu0  ;;  %v1622_v60 = vpop.f32.mrf.mxu1  ;;  %3884 = vmatprep.subr.bf16.mxu1 %v4001_v30 }
 0x1a0   : > { %v1464_v58 = vadd.f32 %v3651_v1, %v4925_v20  ;;  %v5071_v23 = vadd.f32 %v1606_v35, %v1461_v33  ;;  %v777_v20 = vrot.slane %v4886_v41, 1  ;;  %3885 = vmatpush3.bf16.msra.mxu1 %v4001_v30 }
 0x1a1   : > { %v1397_v57 = vpop.f32.mrf.mxu0  ;;  %v3691_v37 = vpop.f32.mrf.mxu1 }
 0x1a2   : > { %v1462_v16 = vadd.f32 %v1397_v57, %v1172_v29  ;;  %v5073_v34 = vadd.f32 %v3687_v8, %v1464_v58  ;;  %v779_v41 = vsel %vm725_vm2, %v777_v20, %v778_v45  ;;  %v5647_v58 = vld [vmem:[#allocation11_spill] sm:$0xff]  ;;  %v5648_v57 = vld [vmem:[#allocation9_spill] sm:$0xff] }
 0x1a3   : > { %v3654_v48 = vpop.f32.mrf.mxu0  ;;  %3869 = vmatmul.mubr.msk.bf16.gmra.mxu0 %vm261_vm0, %v4737_v19  ;;  %v1625_v63 = vpop.f32.mrf.mxu1 }
 0x1a4   : > { %v1467_v25 = vadd.f32 %v3654_v48, %v4934_v15  ;;  %v5081_v51 = vadd.f32 %v1609_v12, %v1462_v16  ;;  %3872 = vmatprep.mubr.msk.bf16.mxu0 %vm261_vm0, %v4801_v53  ;;  %v1188_v15 = vadd.f32 %v4932_v31, %v4943_v9  ;;  %v5649_v16 = vld [vmem:[#allocation10_spill] sm:$0xff] }
 0x1a5   : > { %v1410_v35 = vpop.f32.mrf.mxu0  ;;  %v3694_v0 = vpop.f32.mrf.mxu1 }
 0x1a6   : > { %v1465_v43 = vadd.f32 %v1410_v35, %v4939_v27  ;;  %v5088_v42 = vadd.f32 %v3690_v17, %v1467_v25  ;;  %v4002_v27 = vld [vmem:[%s5629_s3 + $0x10] sm:$0xff]  }
 0x1a7   : > { %v3655_v19 = vpop.f32.mrf.mxu0  ;;  %v1638_v8 = vpop.f32.mrf.mxu1  ;;  %3886 = vmatprep.subr.bf16.mxu1 %v4002_v27 }
 0x1a8   : > { %v1468_v54 = vadd.f32 %v3655_v19, %v4941_v2  ;;  %v5093_v53 = vadd.f32 %v1622_v60, %v1465_v43  ;;  %3887 = vmatpush3.bf16.msra.mxu1 %v4002_v27 }
 0x1a9   : > { %v1413_v46 = vpop.f32.mrf.mxu0  ;;  %v3695_v5 = vpop.f32.mrf.mxu1 }
 0x1aa   : > { %v1466_v38 = vadd.f32 %v1413_v46, %v1188_v15  ;;  %v5096_v12 = vadd.f32 %v3691_v37, %v1468_v54  ;;  %v1204_v37 = vadd.f32 %v5648_v57, %v5647_v58 }
 0x1ab   : > { %v3658_v32 = vpop.f32.mrf.mxu0  ;;  %3873 = vmatmul.mubr.msk.bf16.gmra.mxu0 %vm261_vm0, %v779_v41  ;;  %v1641_v55 = vpop.f32.mrf.mxu1 }
 0x1ac   : > { %v1471_v31 = vadd.f32 %v3658_v32, %v4949_v40  ;;  %v5103_v2 = vadd.f32 %v1625_v63, %v1466_v38 }
 0x1ad   : > { %v1426_v9 = vpop.f32.mrf.mxu0  ;;  %v3738_v17 = vpop.f32.mrf.mxu1 }
 0x1ae   : > { %v1469_v33 = vadd.f32 %v1426_v9, %v4953_v36  ;;  %v5106_v1 = vadd.f32 %v3694_v0, %v1471_v31  ;;  %v4003_v36 = vld [vmem:[%s5629_s3 + $0x8] sm:$0xff]  }
 0x1af   : > { %v3659_v60 = vpop.f32.mrf.mxu0  ;;  %v1952_v29 = vpop.f32.mrf.mxu1  ;;  %3888 = vmatprep.subr.bf16.mxu1 %v4003_v36 }
 0x1b0   : > { %v1472_v30 = vadd.f32 %v3659_v60, %v5649_v16  ;;  %v5111_v48 = vadd.f32 %v1638_v8, %v1469_v33  ;;  %3889 = vmatpush3.bf16.msra.mxu1 %v4003_v36 }
 0x1b1   : > { %v1429_v40 = vpop.f32.mrf.mxu0  ;;  %v5113_v63 = vpop.f32.mrf.mxu1 }
 0x1b2   : > { %v1470_v25 = vadd.f32 %v1429_v40, %v1204_v37  ;;  %v5115_v20 = vadd.f32 %v3695_v5, %v1472_v30  ;;  %v5650_v5 = vld [vmem:[#allocation12_spill] sm:$0xff]  ;;  %v1658_v37 = vadd.f32 %v4979_v59, %v4991_v4 }
 0x1b3   : > { %v3702_v45 = vpop.f32.mrf.mxu0  ;;  %v5120_v35 = vpop.f32.mrf.mxu1  ;;  %v1654_v38 = vadd.f32 %v5650_v5, %v4973_v6  ;;  %v4004_v6 = vld [vmem:[%s5629_s3] sm:$0xff]  }
 0x1b4   : > { %v5122_v0 = vadd.f32 %v1641_v55, %v1470_v25  ;;  %v1868_v43 = vadd.f32 %v3702_v45, %v4967_v39  ;;  %3890 = vmatprep.subr.bf16.mxu1 %v4004_v6 }
 0x1b5   : > { %v1739_v19 = vpop.f32.mrf.mxu0  ;;  %v3742_v8 = vpop.f32.mrf.mxu1  ;;  %3891 = vmatpush3.bf16.msra.mxu1 %v4004_v6  ;;  %v1666_v6 = vadd.f32 %v5021_v10, %v5033_v24 }
 0x1b6   : > { %v1866_v15 = vadd.f32 %v1739_v19, %v4970_v61  ;;  %v5126_v54 = vadd.f32 %v3738_v17, %v1868_v43 }
 0x1b7   : > { %v3703_v41 = vpop.f32.mrf.mxu0  ;;  %v1968_v46 = vpop.f32.mrf.mxu1 }
 0x1b8   : > { %v5131_v27 = vadd.f32 %v3703_v41, %v4975_v21  ;;  %v5133_v32 = vadd.f32 %v1952_v29, %v1866_v15  ;;  %v1662_v15 = vadd.f32 %v5000_v62, %v5012_v14 }
 0x1b9   : > { %v1742_v55 = vpop.f32.mrf.mxu0  ;;  %v5135_v39 = vpop.f32.mrf.mxu1 }
 0x1ba   : > { %v5137_v31 = vadd.f32 %v1742_v55, %v1654_v38 }
 0x1bb   : > { %v3706_v9 = vpop.f32.mrf.mxu0  ;;  %v5139_v33 = vpop.f32.mrf.mxu1 }
 0x1bc   : > { %v1872_v61 = vadd.f32 %v3706_v9, %v4985_v18 }
 0x1bd   : > { %v1755_v17 = vpop.f32.mrf.mxu0  ;;  %v3746_v60 = vpop.f32.mrf.mxu1 }
 0x1be   : > { %v1870_v21 = vadd.f32 %v1755_v17, %v4988_v47  ;;  %v5146_v29 = vadd.f32 %v3742_v8, %v1872_v61 }
 0x1bf   : > { %v3707_v58 = vpop.f32.mrf.mxu0  ;;  %v1984_v57 = vpop.f32.mrf.mxu1 }
 0x1c0   : > { %v5151_v16 = vadd.f32 %v3707_v58, %v4993_v56  ;;  %v5153_v18 = vadd.f32 %v1968_v46, %v1870_v21 }
 0x1c1   : > { %v1758_v30 = vpop.f32.mrf.mxu0  ;;  %v5155_v40 = vpop.f32.mrf.mxu1 }
 0x1c2   : > { %v5157_v25 = vadd.f32 %v1758_v30, %v1658_v37 }
 0x1c3   : > { %v3710_v47 = vpop.f32.mrf.mxu0  ;;  %v5159_v36 = vpop.f32.mrf.mxu1 }
 0x1c4   : > { %v1876_v45 = vadd.f32 %v3710_v47, %v5006_v13 }
 0x1c5   : > { %v1771_v43 = vpop.f32.mrf.mxu0  ;;  %v3750_v19 = vpop.f32.mrf.mxu1 }
 0x1c6   : > { %v1874_v59 = vadd.f32 %v1771_v43, %v5009_v26  ;;  %v5163_v4 = vadd.f32 %v3746_v60, %v1876_v45 }
 0x1c7   : > { %v3711_v56 = vpop.f32.mrf.mxu0  ;;  %v2000_v8 = vpop.f32.mrf.mxu1 }
 0x1c8   : > { %v5168_v41 = vadd.f32 %v3711_v56, %v5014_v28  ;;  %v5170_v46 = vadd.f32 %v1984_v57, %v1874_v59 }
 0x1c9   : > { %v1774_v5 = vpop.f32.mrf.mxu0  ;;  %v5172_v38 = vpop.f32.mrf.mxu1 }
 0x1ca   : > { %v5174_v13 = vadd.f32 %v1774_v5, %v1662_v15 }
 0x1cb   : > { %v3714_v55 = vpop.f32.mrf.mxu0  ;;  %v5176_v9 = vpop.f32.mrf.mxu1 }
 0x1cc   : > { %v1880_v26 = vadd.f32 %v3714_v55, %v5027_v52 }
 0x1cd   : > { %v1787_v61 = vpop.f32.mrf.mxu0  ;;  %v3754_v17 = vpop.f32.mrf.mxu1 }
 0x1ce   : > { %v1878_v60 = vadd.f32 %v1787_v61, %v5030_v44  ;;  %v5180_v62 = vadd.f32 %v3750_v19, %v1880_v26 }
 0x1cf   : > { %v3715_v14 = vpop.f32.mrf.mxu0  ;;  %v2016_v28 = vpop.f32.mrf.mxu1 }
 0x1d0   : > { %v5185_v21 = vadd.f32 %v3715_v14, %v5035_v49  ;;  %v5187_v58 = vadd.f32 %v2000_v8, %v1878_v60 }
 0x1d1   : > { %v1790_v57 = vpop.f32.mrf.mxu0  ;;  %v5189_v37 = vpop.f32.mrf.mxu1 }
 0x1d2   : > { %v5191_v52 = vadd.f32 %v1790_v57, %v1666_v6 }
 0x1d3   : > { %v3718_v30 = vpop.f32.mrf.mxu0  ;;  %v5193_v47 = vpop.f32.mrf.mxu1 }
 0x1d4   : > { %v1884_v44 = vadd.f32 %v3718_v30, %v5046_v3 }
 0x1d5   : > { %v1803_v45 = vpop.f32.mrf.mxu0  ;;  %v3758_v43 = vpop.f32.mrf.mxu1 }
 0x1d6   : > { %v1882_v19 = vadd.f32 %v1803_v45, %v5051_v11  ;;  %v5197_v10 = vadd.f32 %v3754_v17, %v1884_v44 }
 0x1d7   : > { %v3719_v24 = vpop.f32.mrf.mxu0  ;;  %v2032_v49 = vpop.f32.mrf.mxu1 }
 0x1d8   : > { %v5200_v59 = vadd.f32 %v3719_v24, %v5053_v7  ;;  %v5202_v56 = vadd.f32 %v2016_v28, %v1882_v19 }
 0x1d9   : > { %v1806_v8 = vpop.f32.mrf.mxu0  ;;  %v5204_v15 = vpop.f32.mrf.mxu1 }
 0x1da   : > { %5651 = vst [vmem:[#allocation11_spill] sm:$0xff] %v5204_v15  ;;  %v5207_v5 = vadd.f32 %v1806_v8, %v5061_v50 }
 0x1db   : > { %v3722_v3 = vpop.f32.mrf.mxu0  ;;  %v5209_v55 = vpop.f32.mrf.mxu1 }
 0x1dc   : > { %5652 = vst [vmem:[#allocation9_spill] sm:$0xff] %v5209_v55  ;;  %v1888_v11 = vadd.f32 %v3722_v3, %v5066_v22 }
 0x1dd   : > { %v1819_v26 = vpop.f32.mrf.mxu0  ;;  %v3762_v61 = vpop.f32.mrf.mxu1 }
 0x1de   : > { %v1886_v17 = vadd.f32 %v1819_v26, %v5071_v23  ;;  %v5213_v60 = vadd.f32 %v3758_v43, %v1888_v11 }
 0x1df   : > { %v3723_v7 = vpop.f32.mrf.mxu0  ;;  %v2048_v14 = vpop.f32.mrf.mxu1 }
 0x1e0   : > { %v5216_v28 = vadd.f32 %v3723_v7, %v5073_v34  ;;  %v5218_v6 = vadd.f32 %v2032_v49, %v1886_v17 }
 0x1e1   : > { %v1822_v50 = vpop.f32.mrf.mxu0  ;;  %v5220_v57 = vpop.f32.mrf.mxu1 }
 0x1e2   : > { %5653 = vst [vmem:[#allocation10_spill] sm:$0xff] %v5216_v28  ;;  %5654 = vst [vmem:[#allocation12_spill] sm:$0xff] %v5220_v57  ;;  %v5223_v30 = vadd.f32 %v1822_v50, %v5081_v51 }
 0x1e3   : > { %v3726_v22 = vpop.f32.mrf.mxu0  ;;  %v5225_v44 = vpop.f32.mrf.mxu1 }
 0x1e4   : > { %5655 = vst [vmem:[#allocation13_spill] sm:$0xff] %v5223_v30  ;;  %5656 = vst [vmem:[#allocation14_spill] sm:$0xff] %v5225_v44  ;;  %v1892_v23 = vadd.f32 %v3726_v22, %v5088_v42 }
 0x1e5   : > { %v1835_v45 = vpop.f32.mrf.mxu0  ;;  %v3766_v43 = vpop.f32.mrf.mxu1 }
 0x1e6   : > { %v1890_v19 = vadd.f32 %v1835_v45, %v5093_v53  ;;  %v5229_v24 = vadd.f32 %v3762_v61, %v1892_v23 }
 0x1e7   : > { %v3727_v34 = vpop.f32.mrf.mxu0  ;;  %v2064_v49 = vpop.f32.mrf.mxu1 }
 0x1e8   : > { %v5232_v8 = vadd.f32 %v3727_v34, %v5096_v12  ;;  %v5234_v3 = vadd.f32 %v2048_v14, %v1890_v19 }
 0x1e9   : > { %v1838_v51 = vpop.f32.mrf.mxu0  ;;  %v5236_v11 = vpop.f32.mrf.mxu1 }
 0x1ea   : > { %5657 = vst [vmem:[#allocation15_spill] sm:$0xff] %v5232_v8  ;;  %5658 = vst [vmem:[#allocation16_spill] sm:$0xff] %v5236_v11  ;;  %v5239_v26 = vadd.f32 %v1838_v51, %v5103_v2 }
 0x1eb   : > { %v3730_v42 = vpop.f32.mrf.mxu0  ;;  %v5242_v53 = vpop.f32.mrf.mxu1 }
 0x1ec   : > { %5659 = vst [vmem:[#allocation17_spill] sm:$0xff] %v5239_v26  ;;  %v1896_v17 = vadd.f32 %v3730_v42, %v5106_v1  ;;  %5660 = vst [vmem:[#allocation18_spill] sm:$0xff] %v5242_v53 }
 0x1ed   : > { %v1851_v7 = vpop.f32.mrf.mxu0  ;;  %v5252_v45 = vpop.f32.mrf.mxu1 }
 0x1ee   : > { %v1894_v61 = vadd.f32 %v1851_v7, %v5111_v48  ;;  %v5245_v50 = vadd.f32 %v3766_v43, %v1896_v17 }
 0x1ef   : > { %v3731_v12 = vpop.f32.mrf.mxu0  ;;  %v5260_v48 = vpop.f32.mrf.mxu1 }
 0x1f0   : > { %v5248_v14 = vadd.f32 %v3731_v12, %v5115_v20  ;;  %v5250_v22 = vadd.f32 %v2064_v49, %v1894_v61 }
 0x1f1   : > { %v1854_v23 = vpop.f32.mrf.mxu0  ;;  %v5267_v49 = vpop.f32.mrf.mxu1 }
 0x1f2   : > { %5661 = vst [vmem:[#allocation19_spill] sm:$0xff] %v5248_v14  ;;  %v5255_v2 = vadd.f32 %v1854_v23, %v5122_v0 }
 0x1f3   : > { %v3774_v1 = vpop.f32.mrf.mxu0  ;;  %v5272_v0 = vpop.f32.mrf.mxu1 }
 0x1f4   : > { %5662 = vst [vmem:[#allocation20_spill] sm:$0xff] %v5255_v2  ;;  %v5258_v19 = vadd.f32 %v3774_v1, %v5126_v54 }
 0x1f5   : > { %v2164_v34 = vpop.f32.mrf.mxu0  ;;  %v5279_v12 = vpop.f32.mrf.mxu1 }
 0x1f6   : > { %v5263_v43 = vadd.f32 %v2164_v34, %v5133_v32 }
 0x1f7   : > { %v3775_v20 = vpop.f32.mrf.mxu0  ;;  %v5286_v34 = vpop.f32.mrf.mxu1 }
 0x1f9   : > { %v5265_v51 = vpop.f32.mrf.mxu0 }
 0x1fb   : > { %v3778_v42 = vpop.f32.mrf.mxu0 }
 0x1fc   : > { %v5270_v17 = vadd.f32 %v3778_v42, %v5146_v29 }
 0x1fd   : > { %v2180_v7 = vpop.f32.mrf.mxu0 }
 0x1fe   : > { %v5275_v54 = vadd.f32 %v2180_v7, %v5153_v18  ;;  %v5293_v18 = vpop.f32.mrf.mxu1 }
 0x1ff   : > { %v5277_v61 = vpop.f32.mrf.mxu0 }
 0x200   : > { %v5300_v14 = vpop.f32.mrf.mxu1 }
 0x201   : > { %v5281_v32 = vpop.f32.mrf.mxu0 }
 0x203   : > { %v3782_v23 = vpop.f32.mrf.mxu0 }
 0x204   : > { %v5284_v1 = vadd.f32 %v3782_v23, %v5163_v4 }
 0x205   : > { %v2196_v29 = vpop.f32.mrf.mxu0 }
 0x206   : > { %v5289_v42 = vadd.f32 %v2196_v29, %v5170_v46  ;;  %v5307_v46 = vpop.f32.mrf.mxu1 }
 0x207   : > { %v5291_v53 = vpop.f32.mrf.mxu0 }
 0x208   : > { %v5314_v8 = vpop.f32.mrf.mxu1 }
 0x209   : > { %v5295_v7 = vpop.f32.mrf.mxu0 }
 0x20b   : > { %v3786_v2 = vpop.f32.mrf.mxu0 }
 0x20c   : > { %v5298_v11 = vadd.f32 %v3786_v2, %v5180_v62 }
 0x20d   : > { %v2212_v4 = vpop.f32.mrf.mxu0 }
 0x20e   : > { %v5303_v23 = vadd.f32 %v2212_v4, %v5187_v58  ;;  %v5321_v58 = vpop.f32.mrf.mxu1 }
 0x20f   : > { %v5305_v44 = vpop.f32.mrf.mxu0 }
 0x210   : > { %v5328_v28 = vpop.f32.mrf.mxu1 }
 0x211   : > { %v5309_v29 = vpop.f32.mrf.mxu0 }
 0x213   : > { %v3790_v26 = vpop.f32.mrf.mxu0 }
 0x214   : > { %v5312_v57 = vadd.f32 %v3790_v26, %v5197_v10 }
 0x215   : > { %v2228_v62 = vpop.f32.mrf.mxu0 }
 0x216   : > { %5663 = vst [vmem:[#allocation21_spill] sm:$0xff] %v5312_v57  ;;  %v5317_v2 = vadd.f32 %v2228_v62, %v5202_v56  ;;  %v5335_v56 = vpop.f32.mrf.mxu1 }
 0x217   : > { %v5319_v55 = vpop.f32.mrf.mxu0 }
 0x218   : > { %5664 = vst [vmem:[#allocation22_spill] sm:$0xff] %v5317_v2  ;;  %5665 = vst [vmem:[#allocation23_spill] sm:$0xff] %v5319_v55 }
 0x219   : > { %v5323_v4 = vpop.f32.mrf.mxu0 }
 0x21a   : > { %5666 = vst [vmem:[#allocation24_spill] sm:$0xff] %v5323_v4  ;;  %v5342_v4 = vpop.f32.mrf.mxu1 }
 0x21b   : > { %v3794_v30 = vpop.f32.mrf.mxu0 }
 0x21c   : > { %v5326_v15 = vadd.f32 %v3794_v30, %v5213_v60 }
 0x21d   : > { %v2244_v10 = vpop.f32.mrf.mxu0 }
 0x21e   : > { %5667 = vst [vmem:[#allocation25_spill] sm:$0xff] %v5326_v15  ;;  %v5331_v26 = vadd.f32 %v2244_v10, %v5218_v6  ;;  %v5349_v6 = vpop.f32.mrf.mxu1 }
 0x21f   : > { %v5333_v57 = vpop.f32.mrf.mxu0 }
 0x220   : > { %5668 = vst [vmem:[#allocation26_spill] sm:$0xff] %v5331_v26  ;;  %5669 = vst [vmem:[#allocation27_spill] sm:$0xff] %v5333_v57 }
 0x221   : > { %v5337_v62 = vpop.f32.mrf.mxu0 }
 0x222   : > { %5670 = vst [vmem:[#allocation28_spill] sm:$0xff] %v5337_v62  ;;  %v5356_v62 = vpop.f32.mrf.mxu1 }
 0x223   : > { %v3798_v2 = vpop.f32.mrf.mxu0 }
 0x224   : > { %v5340_v55 = vadd.f32 %v3798_v2, %v5229_v24 }
 0x225   : > { %v2260_v60 = vpop.f32.mrf.mxu0 }
 0x226   : > { %5671 = vst [vmem:[#allocation29_spill] sm:$0xff] %v5340_v55  ;;  %v5345_v30 = vadd.f32 %v2260_v60, %v5234_v3  ;;  %v2082_v3 = vadd.f32 %v5113_v63, %v5131_v27  ;;  %v5365_v60 = vpop.f32.mrf.mxu1  ;;  %v5381_v63 = vld [vmem:[%s5628_s2] ss:$0 sm:$0xff] }
 0x227   : > { %v5347_v15 = vpop.f32.mrf.mxu0 }
 0x228   : > { %5672 = vst [vmem:[#allocation30_spill] sm:$0xff] %v5345_v30 }
 0x229   : > { %v5351_v10 = vpop.f32.mrf.mxu0 }
 0x22a   : > { %5673 = vst [vmem:[#allocation31_spill] sm:$0xff] %v5351_v10  ;;  %v2080_v10 = vadd.f32 %v5120_v35, %v5137_v31 }
 0x22b   : > { %v3802_v26 = vpop.f32.mrf.mxu0 }
 0x22c   : > { %v5354_v57 = vadd.f32 %v3802_v26, %v5245_v50  ;;  %v2506_v50 = vadd.f32 %v5252_v45, %v5258_v19  ;;  %v2294_v26 = vadd.f32 %v3775_v20, %v2082_v3  ;;  %v2086_v45 = vadd.f32 %v5135_v39, %v5151_v16 }
 0x22d   : > { %v2276_v24 = vpop.f32.mrf.mxu0  ;;  %v2084_v20 = vadd.f32 %v5139_v33, %v5157_v25 }
 0x22e   : > { %5674 = vst [vmem:[#allocation32_spill] sm:$0xff] %v5354_v57  ;;  %v5359_v2 = vadd.f32 %v2276_v24, %v5250_v22  ;;  %v2504_v22 = vadd.f32 %v5260_v48, %v5263_v43  ;;  %v2292_v24 = vadd.f32 %v5265_v51, %v2080_v10  ;;  %v2507_v35 = vadd.f32 %v5267_v49, %v2294_v26 }
 0x22f   : > { %v5361_v55 = vpop.f32.mrf.mxu0  ;;  %v2298_v51 = vadd.f32 %v5277_v61, %v2086_v45  ;;  %v2510_v49 = vadd.f32 %v5279_v12, %v5270_v17 }
 0x230   : > { %5675 = vst [vmem:[#allocation33_spill] sm:$0xff] %v5359_v2  ;;  %5676 = vst [vmem:[#allocation34_spill] sm:$0xff] %v5361_v55  ;;  %v5376_v55 = vpop.f32.mrf.mxu1  ;;  %v2505_v48 = vadd.f32 %v5272_v0, %v2292_v24  ;;  %v2508_v0 = vadd.f32 %v5286_v34, %v5275_v54  ;;  %v2090_v54 = vadd.f32 %v5155_v40, %v5168_v41 }
 0x231   : > { %v5367_v30 = vpop.f32.mrf.mxu0  ;;  %v2511_v24 = vadd.f32 %v5293_v18, %v2298_v51  ;;  %v2088_v18 = vadd.f32 %v5159_v36, %v5174_v13 }
 0x232   : > { %v5391_v10 = vpop.f32.mrf.mxu1 }
 0x233   : > { %v3846_v57 = vpop.f32.mrf.mxu0 }
 0x234   : > { %v2719_v2 = vadd.f32 %v3846_v57, %v2506_v50 }
 0x235   : > { %v2590_v27 = vpop.f32.mrf.mxu0 }
 0x236   : > { %v2717_v31 = vadd.f32 %v2590_v27, %v2504_v22  ;;  %v2758_v43 = vadd.f32 %v5381_v63, %v2719_v2  ;;  %v2296_v2 = vadd.f32 %v5281_v32, %v2084_v20  ;;  %v5402_v27 = vpop.f32.mrf.mxu1 }
 0x237   : > { %v3847_v19 = vpop.f32.mrf.mxu0 }
 0x238   : > { %v2720_v57 = vadd.f32 %v3847_v19, %v2507_v35  ;;  %v2756_v50 = vadd.f32 %v5381_v63, %v2717_v31  ;;  %v2790_v33 = vmax.f32 %v2758_v43, 0.0  ;;  %v2509_v32 = vadd.f32 %v5300_v14, %v2296_v2  ;;  %v5411_v20 = vpop.f32.mrf.mxu1 }
 0x239   : > { %v2593_v3 = vpop.f32.mrf.mxu0 }
 0x23a   : > { %v2759_v39 = vadd.f32 %v5381_v63, %v2720_v57  ;;  %v2718_v16 = vadd.f32 %v2593_v3, %v2505_v48  ;;  %v2788_v12 = vmax.f32 %v2756_v50, 0.0  ;;  %v2302_v57 = vadd.f32 %v5291_v53, %v2090_v54 }
 0x23b   : > { %v3850_v26 = vpop.f32.mrf.mxu0  ;;  %v2514_v3 = vadd.f32 %v5307_v46, %v5284_v1  ;;  %v2300_v50 = vadd.f32 %v5295_v7, %v2088_v18  ;;  %v5422_v46 = vpop.f32.mrf.mxu1 }
 0x23c   : > { %v2791_v25 = vmax.f32 %v2759_v39, 0.0  ;;  %v2757_v61 = vadd.f32 %v5381_v63, %v2718_v16  ;;  %v2723_v22 = vadd.f32 %v3850_v26, %v2510_v49  ;;  %v2512_v49 = vadd.f32 %v5314_v8, %v5289_v42 }
 0x23d   : > { %v2606_v17 = vpop.f32.mrf.mxu0  ;;  %v2515_v1 = vadd.f32 %v5321_v58, %v2302_v57  ;;  %v2094_v8 = vadd.f32 %v5172_v38, %v5185_v21  ;;  %v2513_v7 = vadd.f32 %v5328_v28, %v2300_v50  ;;  %v2092_v58 = vadd.f32 %v5176_v9, %v5191_v52 }
 0x23e   : > { %v2821_v35 = vpack.c.bf16 %v2791_v25, %v2790_v33  ;;  %v2789_v31 = vmax.f32 %v2757_v61, 0.0  ;;  %v2721_v45 = vadd.f32 %v2606_v17, %v2508_v0  ;;  %v2762_v19 = vadd.f32 %v5381_v63, %v2723_v22 }
 0x23f   : > { %v3851_v34 = vpop.f32.mrf.mxu0  ;;  %v2306_v17 = vadd.f32 %v5305_v44, %v2094_v8  ;;  %v2304_v54 = vadd.f32 %v5309_v29, %v2092_v58 }
 0x240   : > { %v2724_v48 = vadd.f32 %v3851_v34, %v2511_v24  ;;  %v2820_v43 = vpack.c.bf16 %v2789_v31, %v2788_v12  ;;  %v2760_v40 = vadd.f32 %v5381_v63, %v2721_v45  ;;  %v2794_v13 = vmax.f32 %v2762_v19, 0.0  ;;  %v5431_v12 = vpop.f32.mrf.mxu1 }
 0x241   : > { %v2609_v51 = vpop.f32.mrf.mxu0  ;;  %v2518_v31 = vadd.f32 %v5335_v56, %v5298_v11  ;;  %v2516_v45 = vadd.f32 %v5342_v4, %v5303_v23  ;;  %v2519_v11 = vadd.f32 %v5349_v6, %v2306_v17  ;;  %v2098_v23 = vadd.f32 %v5189_v37, %v5200_v59 }
 0x242   : > { %v2763_v41 = vadd.f32 %v5381_v63, %v2724_v48  ;;  %v2722_v14 = vadd.f32 %v2609_v51, %v2509_v32  ;;  %3892 = vmatprep.mubr.bf16.mxu1 %v2820_v43  ;;  %v2792_v2 = vmax.f32 %v2760_v40, 0.0  ;;  %v5442_v56 = vpop.f32.mrf.mxu1  ;;  %v2517_v4 = vadd.f32 %v5356_v62, %v2304_v54  ;;  %v5679_v62 = vld [vmem:[#allocation22_spill] sm:$0xff] }
 0x243   : > { %v3854_v36 = vpop.f32.mrf.mxu0  ;;  %3893 = vmatmul.mubr.bf16.vlgmr.msra.gmra.mxu1 %v2821_v35  ;;  %v2096_v6 = vadd.f32 %v5193_v47, %v5207_v5 }
 0x244   : > { %v2795_v53 = vmax.f32 %v2763_v41, 0.0  ;;  %v2761_v39 = vadd.f32 %v5381_v63, %v2722_v14  ;;  %v2727_v16 = vadd.f32 %v3854_v36, %v2514_v3  ;;  %v5677_v41 = vld [vmem:[#allocation23_spill] sm:$0xff]  ;;  %v5678_v36 = vld [vmem:[#allocation21_spill] sm:$0xff] }
 0x245   : > { %v2622_v0 = vpop.f32.mrf.mxu0  ;;  %v2310_v14 = vadd.f32 %v5677_v41, %v2098_v23 }
 0x246   : > { %v2823_v26 = vpack.c.bf16 %v2795_v53, %v2794_v13  ;;  %v2793_v33 = vmax.f32 %v2761_v39, 0.0  ;;  %v2725_v25 = vadd.f32 %v2622_v0, %v2512_v49  ;;  %v2766_v61 = vadd.f32 %v5381_v63, %v2727_v16  ;;  %v3834_v49 = vpop.f32.mrf.mxu1  ;;  %v5680_v16 = vld [vmem:[#allocation24_spill] sm:$0xff] }
 0x247   : > { %v3855_v42 = vpop.f32.mrf.mxu0  ;;  %v2522_v13 = vadd.f32 %v5365_v60, %v5678_v36  ;;  %v2520_v39 = vadd.f32 %v5376_v55, %v5679_v62  ;;  %v2523_v60 = vadd.f32 %v5391_v10, %v2310_v14  ;;  %v5685_v10 = vld [vmem:[#allocation27_spill] sm:$0xff] }
 0x248   : > { %v2728_v22 = vadd.f32 %v3855_v42, %v2515_v1  ;;  %v2822_v24 = vpack.c.bf16 %v2793_v33, %v2792_v2  ;;  %v2764_v38 = vadd.f32 %v5381_v63, %v2725_v25  ;;  %v2798_v52 = vmax.f32 %v2766_v61, 0.0  ;;  %v2473_v33 = vpop.f32.mrf.mxu1  ;;  %v5689_v36 = vld [vmem:[#allocation15_spill] sm:$0xff] }
 0x249   : > { %v2625_v35 = vpop.f32.mrf.mxu0  ;;  %v2308_v1 = vadd.f32 %v5680_v16, %v2096_v6  ;;  %v5691_v16 = vld [vmem:[#allocation17_spill] sm:$0xff] }
 0x24a   : > { %v2767_v21 = vadd.f32 %v5381_v63, %v2728_v22  ;;  %v2726_v28 = vadd.f32 %v2625_v35, %v2513_v7  ;;  %3896 = vmatprep.mubr.bf16.mxu1 %v2822_v24  ;;  %v2796_v48 = vmax.f32 %v2764_v38, 0.0  ;;  %v5681_v22 = vld [vmem:[#allocation10_spill] sm:$0xff]  ;;  %v5682_v24 = vld [vmem:[#allocation11_spill] sm:$0xff] }
 0x24b   : > { %v3858_v9 = vpop.f32.mrf.mxu0  ;;  %3897 = vmatmul.mubr.bf16.gmra.mxu1 %v2823_v26  ;;  %v2102_v55 = vadd.f32 %v5682_v24, %v5681_v22  ;;  %v2521_v17 = vadd.f32 %v5402_v27, %v2308_v1  ;;  %v5687_v27 = vld [vmem:[#allocation26_spill] sm:$0xff] }
 0x24c   : > { %v2799_v44 = vmax.f32 %v2767_v21, 0.0  ;;  %v2765_v34 = vadd.f32 %v5381_v63, %v2726_v28  ;;  %v2731_v32 = vadd.f32 %v3858_v9, %v2518_v31  ;;  %v5683_v21 = vld [vmem:[#allocation13_spill] sm:$0xff]  ;;  %v3835_v9 = vpop.f32.mrf.mxu1  ;;  %v5692_v1 = vld [vmem:[#allocation14_spill] sm:$0xff] }
 0x24d   : > { %v2638_v19 = vpop.f32.mrf.mxu0  ;;  %v5684_v28 = vld [vmem:[#allocation9_spill] sm:$0xff]  ;;  %v2314_v54 = vadd.f32 %v5685_v10, %v2102_v55  ;;  %v5697_v10 = vld [vmem:[#allocation16_spill] sm:$0xff] }
 0x24e   : > { %v2825_v43 = vpack.c.bf16 %v2799_v44, %v2798_v52  ;;  %v2797_v18 = vmax.f32 %v2765_v34, 0.0  ;;  %v2729_v57 = vadd.f32 %v2638_v19, %v2516_v45  ;;  %v2770_v51 = vadd.f32 %v5381_v63, %v2731_v32  ;;  %v5686_v44 = vld [vmem:[#allocation25_spill] sm:$0xff] }
 0x24f   : > { %v3859_v29 = vpop.f32.mrf.mxu0  ;;  %v2100_v45 = vadd.f32 %v5684_v28, %v5683_v21  ;;  %v2526_v34 = vadd.f32 %v5411_v20, %v5686_v44  ;;  %v2527_v20 = vadd.f32 %v5431_v12, %v2314_v54 }
 0x250   : > { %v2732_v3 = vadd.f32 %v3859_v29, %v2519_v11  ;;  %v2824_v40 = vpack.c.bf16 %v2797_v18, %v2796_v48  ;;  %v2768_v53 = vadd.f32 %v5381_v63, %v2729_v57  ;;  %v2802_v47 = vmax.f32 %v2770_v51, 0.0 }
 0x251   : > { %v2641_v50 = vpop.f32.mrf.mxu0  ;;  %v2524_v48 = vadd.f32 %v5422_v46, %v5687_v27 }
 0x252   : > { %v2771_v37 = vadd.f32 %v5381_v63, %v2732_v3  ;;  %v2730_v59 = vadd.f32 %v2641_v50, %v2517_v4  ;;  %3900 = vmatprep.mubr.bf16.mxu1 %v2824_v40  ;;  %v2800_v8 = vmax.f32 %v2768_v53, 0.0  ;;  %v2476_v3 = vpop.f32.mrf.mxu1 }
 0x253   : > { %v3862_v0 = vpop.f32.mrf.mxu0  ;;  %3901 = vmatmul.mubr.bf16.gmra.mxu1 %v2825_v43  ;;  %v5688_v43 = vld [vmem:[#allocation28_spill] sm:$0xff] }
 0x254   : > { %v2803_v5 = vmax.f32 %v2771_v37, 0.0  ;;  %v2769_v2 = vadd.f32 %v5381_v63, %v2730_v59  ;;  %v2735_v26 = vadd.f32 %v3862_v0, %v2522_v13  ;;  %v2312_v18 = vadd.f32 %v5688_v43, %v2100_v45  ;;  %v5690_v13 = vld [vmem:[#allocation12_spill] sm:$0xff]  ;;  %v5696_v45 = vld [vmem:[#allocation19_spill] sm:$0xff] }
 0x255   : > { %v2654_v25 = vpop.f32.mrf.mxu0  ;;  %v2106_v46 = vadd.f32 %v5690_v13, %v5689_v36  ;;  %v2104_v0 = vadd.f32 %v5692_v1, %v5691_v16  ;;  %v2110_v54 = vadd.f32 %v5697_v10, %v5696_v45 }
 0x256   : > { %v2827_v42 = vpack.c.bf16 %v2803_v5, %v2802_v47  ;;  %v2801_v7 = vmax.f32 %v2769_v2, 0.0  ;;  %v2733_v61 = vadd.f32 %v2654_v25, %v2520_v39  ;;  %v2774_v35 = vadd.f32 %v5381_v63, %v2735_v26  ;;  %v3838_v47 = vpop.f32.mrf.mxu1  ;;  %v5693_v2 = vld [vmem:[#allocation29_spill] sm:$0xff] }
 0x257   : > { %v3863_v58 = vpop.f32.mrf.mxu0  ;;  %v2525_v37 = vadd.f32 %v5442_v56, %v2312_v18  ;;  %v2318_v12 = vadd.f32 %v5347_v15, %v2106_v46  ;;  %v2530_v26 = vadd.f32 %v3834_v49, %v5693_v2  ;;  %v5694_v56 = vld [vmem:[#allocation30_spill] sm:$0xff] }
 0x258   : > { %v2736_v31 = vadd.f32 %v3863_v58, %v2523_v60  ;;  %v2826_v38 = vpack.c.bf16 %v2801_v7, %v2800_v8  ;;  %v2772_v32 = vadd.f32 %v5381_v63, %v2733_v61  ;;  %v2806_v23 = vmax.f32 %v2774_v35, 0.0  ;;  %v5695_v7 = vld [vmem:[#allocation31_spill] sm:$0xff]  ;;  %v2489_v35 = vpop.f32.mrf.mxu1 }
 0x259   : > { %v2657_v52 = vpop.f32.mrf.mxu0  ;;  %v2316_v61 = vadd.f32 %v5695_v7, %v2104_v0 }
 0x25a   : > { %v2775_v11 = vadd.f32 %v5381_v63, %v2736_v31  ;;  %v2734_v19 = vadd.f32 %v2657_v52, %v2521_v17  ;;  %3904 = vmatprep.mubr.bf16.mxu1 %v2826_v38  ;;  %v2804_v6 = vmax.f32 %v2772_v32, 0.0  ;;  %v2531_v17 = vadd.f32 %v3835_v9, %v2318_v12  ;;  %v3839_v43 = vpop.f32.mrf.mxu1 }
 0x25b   : > { %v3866_v57 = vpop.f32.mrf.mxu0  ;;  %3905 = vmatmul.mubr.bf16.gmra.mxu1 %v2827_v42  ;;  %v2528_v42 = vadd.f32 %v2473_v33, %v5694_v56  ;;  %v2529_v52 = vadd.f32 %v2476_v3, %v2316_v61 }
 0x25c   : > { %v2807_v29 = vmax.f32 %v2775_v11, 0.0  ;;  %v2773_v4 = vadd.f32 %v5381_v63, %v2734_v19  ;;  %v2739_v51 = vadd.f32 %v3866_v57, %v2526_v34  ;;  %v5698_v11 = vld [vmem:[#allocation20_spill] sm:$0xff]  ;;  %v5699_v19 = vld [vmem:[#allocation18_spill] sm:$0xff]  ;;  %v2492_v46 = vpop.f32.mrf.mxu1 }
 0x25d   : > { %v2670_v40 = vpop.f32.mrf.mxu0  ;;  %v2108_v27 = vadd.f32 %v5699_v19, %v5698_v11  ;;  %v5701_v57 = vld [vmem:[#allocation32_spill] sm:$0xff] }
 0x25e   : > { %v2829_v41 = vpack.c.bf16 %v2807_v29, %v2806_v23  ;;  %v2805_v14 = vmax.f32 %v2773_v4, 0.0  ;;  %v2737_v50 = vadd.f32 %v2670_v40, %v2524_v48  ;;  %v2778_v59 = vadd.f32 %v5381_v63, %v2739_v51  ;;  %v5700_v48 = vld [vmem:[#allocation34_spill] sm:$0xff] }
 0x25f   : > { %v3867_v53 = vpop.f32.mrf.mxu0  ;;  %v2322_v9 = vadd.f32 %v5700_v48, %v2110_v54  ;;  %v2534_v23 = vadd.f32 %v3838_v47, %v5701_v57  ;;  %v2320_v40 = vadd.f32 %v5367_v30, %v2108_v27 }
 0x260   : > { %v2740_v62 = vadd.f32 %v3867_v53, %v2527_v20  ;;  %v2828_v39 = vpack.c.bf16 %v2805_v14, %v2804_v6  ;;  %v2776_v60 = vadd.f32 %v5381_v63, %v2737_v50  ;;  %v2810_v24 = vmax.f32 %v2778_v59, 0.0  ;;  %v5702_v20 = vld [vmem:[#allocation33_spill] sm:$0xff] }
 0x261   : > { %v2673_v5 = vpop.f32.mrf.mxu0  ;;  %v2532_v3 = vadd.f32 %v2489_v35, %v5702_v20  ;;  %v2535_v13 = vadd.f32 %v3839_v43, %v2322_v9  ;;  %v2533_v1 = vadd.f32 %v2492_v46, %v2320_v40 }
 0x262   : > { %v2779_v25 = vadd.f32 %v5381_v63, %v2740_v62  ;;  %v2738_v8 = vadd.f32 %v2673_v5, %v2525_v37  ;;  %3908 = vmatprep.mubr.bf16.mxu1 %v2828_v39  ;;  %v2808_v31 = vmax.f32 %v2776_v60, 0.0 }
 0x263   : > { %v3870_v22 = vpop.f32.mrf.mxu0  ;;  %3909 = vmatmul.mubr.bf16.gmra.mxu1 %v2829_v41 }
 0x264   : > { %v2811_v55 = vmax.f32 %v2779_v25, 0.0  ;;  %v2777_v15 = vadd.f32 %v5381_v63, %v2738_v8  ;;  %v2743_v58 = vadd.f32 %v3870_v22, %v2530_v26  ;;  %v5510_v22 = vld [vmem:[%s5630_s4] ss:$0 sm:$0xff] }
 0x265   : > { %v2686_v49 = vpop.f32.mrf.mxu0 }
 0x266   : > { %v2831_v38 = vpack.c.bf16 %v2811_v55, %v2810_v24  ;;  %v2809_v21 = vmax.f32 %v2777_v15, 0.0  ;;  %v2741_v28 = vadd.f32 %v2686_v49, %v2528_v42  ;;  %v2782_v44 = vadd.f32 %v5381_v63, %v2743_v58 }
 0x267   : > { %v3871_v33 = vpop.f32.mrf.mxu0 }
 0x268   : > { %v2744_v34 = vadd.f32 %v3871_v33, %v2531_v17  ;;  %v2830_v32 = vpack.c.bf16 %v2809_v21, %v2808_v31  ;;  %v2780_v29 = vadd.f32 %v5381_v63, %v2741_v28  ;;  %v2814_v41 = vmax.f32 %v2782_v44, 0.0 }
 0x269   : > { %v2689_v18 = vpop.f32.mrf.mxu0 }
 0x26a   : > { %v2783_v4 = vadd.f32 %v5381_v63, %v2744_v34  ;;  %v2742_v51 = vadd.f32 %v2689_v18, %v2529_v52  ;;  %3912 = vmatprep.mubr.bf16.mxu1 %v2830_v32  ;;  %v2812_v37 = vmax.f32 %v2780_v29, 0.0 }
 0x26b   : > { %v3874_v6 = vpop.f32.mrf.mxu0  ;;  %3913 = vmatmul.mubr.bf16.gmra.mxu1 %v2831_v38 }
 0x26c   : > { %v2815_v14 = vmax.f32 %v2783_v4, 0.0  ;;  %v2781_v50 = vadd.f32 %v5381_v63, %v2742_v51  ;;  %v2747_v36 = vadd.f32 %v3874_v6, %v2534_v23 }
 0x26d   : > { %v2702_v53 = vpop.f32.mrf.mxu0 }
 0x26e   : > { %v2833_v59 = vpack.c.bf16 %v2815_v14, %v2814_v41  ;;  %v2813_v62 = vmax.f32 %v2781_v50, 0.0  ;;  %v2745_v39 = vadd.f32 %v2702_v53, %v2532_v3  ;;  %v2786_v0 = vadd.f32 %v5381_v63, %v2747_v36 }
 0x26f   : > { %v3875_v16 = vpop.f32.mrf.mxu0 }
 0x270   : > { %v2748_v12 = vadd.f32 %v3875_v16, %v2535_v13  ;;  %v2832_v30 = vpack.c.bf16 %v2813_v62, %v2812_v37  ;;  %v2784_v5 = vadd.f32 %v5381_v63, %v2745_v39  ;;  %v2818_v60 = vmax.f32 %v2786_v0, 0.0 }
 0x271   : > { %v2705_v47 = vpop.f32.mrf.mxu0 }
 0x272   : > { %v2787_v2 = vadd.f32 %v5381_v63, %v2748_v12  ;;  %v2746_v26 = vadd.f32 %v2705_v47, %v2533_v1  ;;  %3916 = vmatprep.mubr.bf16.mxu1 %v2832_v30  ;;  %v2816_v56 = vmax.f32 %v2784_v5, 0.0 }
 0x273   : > { %3917 = vmatmul.mubr.bf16.gmra.mxu1 %v2833_v59 }
 0x274   : > { %v2819_v25 = vmax.f32 %v2787_v2, 0.0  ;;  %v2785_v8 = vadd.f32 %v5381_v63, %v2746_v26 }
 0x276   : > { %v2835_v42 = vpack.c.bf16 %v2819_v25, %v2818_v60  ;;  %v2817_v7 = vmax.f32 %v2785_v8, 0.0 }
 0x278   : > { %v2834_v61 = vpack.c.bf16 %v2817_v7, %v2816_v56 }
 0x27a   : > { %3920 = vmatprep.mubr.bf16.mxu1 %v2834_v61 }
 0x27b   : > { %3921 = vmatmul.mubr.bf16.gmra.mxu1 %v2835_v42 }
 0x303   : > { %v3894_v63 = vpop.f32.mrf.mxu1 }
 0x304   : > { %v2950_v24 = vadd.f32 %v3894_v63, %v5510_v22 }
 0x305   : > { %v2941_v55 = vpop.f32.mrf.mxu1 }
 0x306   : > { %3071 = vst.msk [vmem:[%s5515_s25 + $0x10] sm:$0xff] %vm3068_vm4, %v2950_v24  ;;  %v2942_v15 = vadd.f32 %v5510_v22, %v2941_v55 }
 0x307   : > { %v3895_v58 = vpop.f32.mrf.mxu1 }
 0x308   : > { %3069 = vst.msk [vmem:[%s5515_s25] sm:$0xff] %vm3068_vm4, %v2942_v15  ;;  %v2953_v17 = vadd.f32 %v3895_v58, %v5510_v22 }
 0x309   : > { %v2944_v35 = vpop.f32.mrf.mxu1 }
 0x30a   : > { %3072 = vst.msk [vmem:[%s5515_s25 + $0x18] sm:$0xff] %vm3068_vm4, %v2953_v17  ;;  %v2945_v49 = vadd.f32 %v5510_v22, %v2944_v35 }
 0x30b   : > { %v3898_v31 = vpop.f32.mrf.mxu1 }
 0x30c   : > { %3070 = vst.msk [vmem:[%s5515_s25 + $0x8] sm:$0xff] %vm3068_vm4, %v2945_v49  ;;  %v2966_v38 = vadd.f32 %v3898_v31, %v5510_v22 }
 0x30d   : > { %v2957_v21 = vpop.f32.mrf.mxu1 }
 0x30e   : > { %3075 = vst.msk [vmem:[%s5515_s25 + $0x30] sm:$0xff] %vm3068_vm4, %v2966_v38  ;;  %v2958_v28 = vadd.f32 %v5510_v22, %v2957_v21 }
 0x30f   : > { %v3899_v45 = vpop.f32.mrf.mxu1 }
 0x310   : > { %3073 = vst.msk [vmem:[%s5515_s25 + $0x20] sm:$0xff] %vm3068_vm4, %v2958_v28  ;;  %v2969_v10 = vadd.f32 %v3899_v45, %v5510_v22 }
 0x311   : > { %v2960_v54 = vpop.f32.mrf.mxu1 }
 0x312   : > { %3076 = vst.msk [vmem:[%s5515_s25 + $0x38] sm:$0xff] %vm3068_vm4, %v2969_v10  ;;  %v2961_v33 = vadd.f32 %v5510_v22, %v2960_v54 }
 0x313   : > { %v3902_v52 = vpop.f32.mrf.mxu1 }
 0x314   : > { %3074 = vst.msk [vmem:[%s5515_s25 + $0x28] sm:$0xff] %vm3068_vm4, %v2961_v33  ;;  %v2982_v44 = vadd.f32 %v3902_v52, %v5510_v22 }
 0x315   : > { %v2973_v34 = vpop.f32.mrf.mxu1 }
 0x316   : > { %3079 = vst.msk [vmem:[%s5515_s25 + $0x50] sm:$0xff] %vm3068_vm4, %v2982_v44  ;;  %v2974_v32 = vadd.f32 %v5510_v22, %v2973_v34 }
 0x317   : > { %v3903_v11 = vpop.f32.mrf.mxu1 }
 0x318   : > { %3077 = vst.msk [vmem:[%s5515_s25 + $0x40] sm:$0xff] %vm3068_vm4, %v2974_v32  ;;  %v2985_v19 = vadd.f32 %v3903_v11, %v5510_v22 }
 0x319   : > { %v2976_v27 = vpop.f32.mrf.mxu1 }
 0x31a   : > { %3080 = vst.msk [vmem:[%s5515_s25 + $0x58] sm:$0xff] %vm3068_vm4, %v2985_v19  ;;  %v2977_v48 = vadd.f32 %v5510_v22, %v2976_v27 }
 0x31b   : > { %v3906_v9 = vpop.f32.mrf.mxu1 }
 0x31c   : > { %3078 = vst.msk [vmem:[%s5515_s25 + $0x48] sm:$0xff] %vm3068_vm4, %v2977_v48  ;;  %v2998_v43 = vadd.f32 %v3906_v9, %v5510_v22 }
 0x31d   : > { %v2989_v18 = vpop.f32.mrf.mxu1 }
 0x31e   : > { %3083 = vst.msk [vmem:[%s5515_s25 + $0x70] sm:$0xff] %vm3068_vm4, %v2998_v43  ;;  %v2990_v57 = vadd.f32 %v5510_v22, %v2989_v18 }
 0x31f   : > { %v3907_v23 = vpop.f32.mrf.mxu1 }
 0x320   : > { %3081 = vst.msk [vmem:[%s5515_s25 + $0x60] sm:$0xff] %vm3068_vm4, %v2990_v57  ;;  %v3001_v29 = vadd.f32 %v3907_v23, %v5510_v22 }
 0x321   : > { %v2992_v4 = vpop.f32.mrf.mxu1 }
 0x322   : > { %3084 = vst.msk [vmem:[%s5515_s25 + $0x78] sm:$0xff] %vm3068_vm4, %v3001_v29  ;;  %v2993_v51 = vadd.f32 %v5510_v22, %v2992_v4 }
 0x323   : > { %v3910_v20 = vpop.f32.mrf.mxu1 }
 0x324   : > { %3082 = vst.msk [vmem:[%s5515_s25 + $0x68] sm:$0xff] %vm3068_vm4, %v2993_v51  ;;  %v3014_v3 = vadd.f32 %v3910_v20, %v5510_v22 }
 0x325   : > { %v3005_v40 = vpop.f32.mrf.mxu1 }
 0x326   : > { %3087 = vst.msk [vmem:[%s5515_s25 + $0x90] sm:$0xff] %vm3068_vm4, %v3014_v3  ;;  %v3006_v6 = vadd.f32 %v5510_v22, %v3005_v40 }
 0x327   : > { %v3911_v41 = vpop.f32.mrf.mxu1 }
 0x328   : > { %3085 = vst.msk [vmem:[%s5515_s25 + $0x80] sm:$0xff] %vm3068_vm4, %v3006_v6  ;;  %v3017_v14 = vadd.f32 %v3911_v41, %v5510_v22 }
 0x329   : > { %v3008_v50 = vpop.f32.mrf.mxu1 }
 0x32a   : > { %3088 = vst.msk [vmem:[%s5515_s25 + $0x98] sm:$0xff] %vm3068_vm4, %v3017_v14  ;;  %v3009_v36 = vadd.f32 %v5510_v22, %v3008_v50 }
 0x32b   : > { %v3914_v13 = vpop.f32.mrf.mxu1 }
 0x32c   : > { %3086 = vst.msk [vmem:[%s5515_s25 + $0x88] sm:$0xff] %vm3068_vm4, %v3009_v36  ;;  %v3030_v46 = vadd.f32 %v3914_v13, %v5510_v22 }
 0x32d   : > { %v3021_v53 = vpop.f32.mrf.mxu1 }
 0x32e   : > { %3091 = vst.msk [vmem:[%s5515_s25 + $0xb0] sm:$0xff] %vm3068_vm4, %v3030_v46  ;;  %v3022_v37 = vadd.f32 %v5510_v22, %v3021_v53 }
 0x32f   : > { %v3915_v59 = vpop.f32.mrf.mxu1 }
 0x330   : > { %3089 = vst.msk [vmem:[%s5515_s25 + $0xa0] sm:$0xff] %vm3068_vm4, %v3022_v37  ;;  %v3033_v62 = vadd.f32 %v3915_v59, %v5510_v22 }
 0x331   : > { %v3024_v39 = vpop.f32.mrf.mxu1 }
 0x332   : > { %3092 = vst.msk [vmem:[%s5515_s25 + $0xb8] sm:$0xff] %vm3068_vm4, %v3033_v62  ;;  %v3025_v16 = vadd.f32 %v5510_v22, %v3024_v39 }
 0x333   : > { %v3918_v1 = vpop.f32.mrf.mxu1 }
 0x334   : > { %3090 = vst.msk [vmem:[%s5515_s25 + $0xa8] sm:$0xff] %vm3068_vm4, %v3025_v16  ;;  %v3046_v0 = vadd.f32 %v3918_v1, %v5510_v22 }
 0x335   : > { %v3037_v12 = vpop.f32.mrf.mxu1 }
 0x336   : > { %3095 = vst.msk [vmem:[%s5515_s25 + $0xd0] sm:$0xff] %vm3068_vm4, %v3046_v0  ;;  %v3038_v30 = vadd.f32 %v5510_v22, %v3037_v12 }
 0x337   : > { %v3919_v47 = vpop.f32.mrf.mxu1 }
 0x338   : > { %3093 = vst.msk [vmem:[%s5515_s25 + $0xc0] sm:$0xff] %vm3068_vm4, %v3038_v30  ;;  %v3049_v5 = vadd.f32 %v3919_v47, %v5510_v22 }
 0x339   : > { %v3040_v2 = vpop.f32.mrf.mxu1 }
 0x33a   : > { %3096 = vst.msk [vmem:[%s5515_s25 + $0xd8] sm:$0xff] %vm3068_vm4, %v3049_v5  ;;  %v3041_v26 = vadd.f32 %v5510_v22, %v3040_v2 }
 0x33b   : > { %v3922_v60 = vpop.f32.mrf.mxu1 }
 0x33c   : > { %3094 = vst.msk [vmem:[%s5515_s25 + $0xc8] sm:$0xff] %vm3068_vm4, %v3041_v26  ;;  %v3062_v25 = vadd.f32 %v3922_v60, %v5510_v22 }
 0x33d   : > { %v3053_v8 = vpop.f32.mrf.mxu1 }
 0x33e   : > { %3099 = vst.msk [vmem:[%s5515_s25 + $0xf0] sm:$0xff] %vm3068_vm4, %v3062_v25  ;;  %v3054_v56 = vadd.f32 %v5510_v22, %v3053_v8 }
 0x33f   : > { %v3923_v42 = vpop.f32.mrf.mxu1 }
 0x340   : > { %3097 = vst.msk [vmem:[%s5515_s25 + $0xe0] sm:$0xff] %vm3068_vm4, %v3054_v56  ;;  %v3065_v7 = vadd.f32 %v3923_v42, %v5510_v22 }
 0x341   : > { %v3056_v61 = vpop.f32.mrf.mxu1 }
 0x342   : > { %3100 = vst.msk [vmem:[%s5515_s25 + $0xf8] sm:$0xff] %vm3068_vm4, %v3065_v7  ;;  %v3057_v63 = vadd.f32 %v5510_v22, %v3056_v61 }
 0x344   : > { %3098 = vst.msk [vmem:[%s5515_s25 + $0xe8] sm:$0xff] %vm3068_vm4, %v3057_v63 }
 0x345 PF: > { %p16_p0 = scmp.ge.s32.totalorder %s4180_s28, 4   ;;  %s5703_s18 = smov %s4089_s19 }
 0x346   : > { %s5704_s19 = smov %s4093_s20  ;;  %s5705_s20 = smov %s4197_s11 }
 0x347   : > { %s5706_s21 = smov %s4180_s28  ;;  %18 = sbr.rel (!%p16_p0) target bundleno = 4 (0x4), region = 93 }
 0x34c   :  { %3122 = vsyncpa [#allocation4], 1 }
 0x34d   :  { %3124 = vsyncpa [#allocation4 + $0x1], 1 }
 0x34e   :  { %3125 = vsyncpa [#allocation6], 1 }

</bundles_post_ra>
